<compile_context>
chip_gen: v7x
topology: tpu7x:2x2x1
jax: 0.10.0
libtpu: 0.0.40
codegen_flags: <defaults>
</compile_context>

<pallas_src>
import functools

import jax
import jax.numpy as jnp
import numpy as np
from jax.experimental import pallas as pl
from jax.experimental.pallas import tpu as pltpu


def _mha_kernel(x_ref, wqkv_ref, wo_ref, bo_ref, hmask_ref, o_ref, *, heads):
    """One grid step = gb (b, n) groups: all T steps, all heads; bf16 MXU / f32 acc."""
    gb, T, C = x_ref.shape
    Dh = C // heads
    HT = heads * T
    M = gb * T
    scale = float(1.0 / np.sqrt(Dh))

    # ---- fused QKV projection: one (M, C) x (C, 3C) bf16 MXU matmul ---------------
    x2d = x_ref[...].reshape(M, C).astype(jnp.bfloat16)
    qkv = jnp.dot(x2d, wqkv_ref[...], preferred_element_type=jnp.float32)   # (M, 3C) f32
    q3 = qkv[:, 0 * C:1 * C].reshape(gb, T, C)
    k3 = qkv[:, 1 * C:2 * C].reshape(gb, T, C)
    v3 = qkv[:, 2 * C:3 * C].reshape(gb, T, C)

    # ---- all heads at once, keys on the lane axis ----------------------------------
    # Row u = h*T + t of q_bd holds q[t] with every channel outside head h zeroed, so
    # one full-C batched contraction against the (unmasked) keys yields the exact
    # per-head dot products: scores[g, h*T+t, s] = <q_h[g,t], k_h[g,s]> * scale.
    hmask = hmask_ref[...]                                             # (HT, C) f32 {0,1}
    q_bd = (jnp.concatenate([q3] * heads, axis=1) * hmask[None]).astype(jnp.bfloat16)
    k_b = k3.astype(jnp.bfloat16)
    v_b = v3.astype(jnp.bfloat16)

    scores = jnp.einsum('guc,gsc->gus', q_bd, k_b,
                        preferred_element_type=jnp.float32) * scale    # (gb, HT, T)

    # Per-head, per-query softmax over the key (lane) axis.  The max is the exact
    # per-head max (no cross-head underflow) and the denominator is >= 1, so the EUP
    # approximate reciprocal needs no clamp.
    m = jnp.max(scores, axis=-1, keepdims=True)
    e = jnp.exp(scores - m)
    denom = jnp.sum(e, axis=-1, keepdims=True)
    attn = e * pl.reciprocal(denom, approx=True)                       # (gb, HT, T) f32

    # ctx_bd[g, h*T+t, c] = sum_s attn_h[g,t,s] * v[g,s,c] over ALL channels c;
    # the head mask then selects, per channel c, the rows belonging to head(c).
    ctx_bd = jnp.einsum('gus,gsc->guc', attn.astype(jnp.bfloat16), v_b,
                        preferred_element_type=jnp.float32)            # (gb, HT, C)
    ctx_m = ctx_bd * hmask[None]
    ctx = ctx_m[:, 0:T, :]
    for h in range(1, heads):                                          # static unroll: VPU adds
        ctx = ctx + ctx_m[:, h * T:(h + 1) * T, :]                     # (gb, T, C)

    # ---- single fused output projection + bias --------------------------------------
    out = jnp.dot(ctx.reshape(M, C).astype(jnp.bfloat16), wo_ref[...],
                  preferred_element_type=jnp.float32) + bo_ref[...]
    o_ref[...] = out.reshape(gb, T, C).astype(o_ref.dtype)


def _groups_per_block(G, T, target_rows):
    """Largest divisor of G whose row count gb*T does not exceed the target."""
    gb = 1
    for d in range(1, G + 1):
        if G % d == 0 and d * T <= max(target_rows, T):
            gb = d
    return gb


def mha_forward(x, wq, wk, wv, wo, bo, *, heads, target_rows_per_block=256):
    """x: [B, N, T, C] f32.  Weights in 'apply' orientation: wq/wk/wv/wo: [C, C], bo: [C]."""
    B, N, T, C = x.shape
    assert C % heads == 0, "embed_size must be divisible by heads"
    Dh = C // heads
    G = B * N
    HT = heads * T

    gb = _groups_per_block(G, T, target_rows_per_block)
    grid = (G // gb,)

    xg = x.reshape(G, T, C)                                           # metadata-only reshape
    wqkv = jnp.concatenate([wq, wk, wv], axis=1).astype(jnp.bfloat16)  # (C, 3C) fused QKV
    wo_b = wo.astype(jnp.bfloat16)
    bo2 = bo.reshape(1, C).astype(jnp.float32)
    # Loop-invariant head mask, hoisted out of the kernel body:
    # hmask[u, c] = 1 iff score-row u = h*T + t and channel c belong to the same head h.
    hmask = jnp.asarray(
        (np.arange(HT)[:, None] // T) == (np.arange(C)[None, :] // Dh),
        dtype=jnp.float32)

    kernel = functools.partial(_mha_kernel, heads=heads)
    out = pl.pallas_call(
        kernel,
        out_shape=jax.ShapeDtypeStruct((G, T, C), x.dtype),
        grid_spec=pltpu.PrefetchScalarGridSpec(
            num_scalar_prefetch=0,
            grid=grid,
            in_specs=[
                pl.BlockSpec((gb, T, C), lambda i: (i, 0, 0)),
                # TODO(synk): at production C, give these constant-index weight/bias/mask
                # specs pipeline_mode=pl.Buffered(1) so loop-invariant operands are not
                # double-buffered inside v7x's tight 64 MiB / 32 MiB-scoped VMEM budget.
                pl.BlockSpec((C, 3 * C), lambda i: (0, 0)),
                pl.BlockSpec((C, C), lambda i: (0, 0)),
                pl.BlockSpec((1, C), lambda i: (0, 0)),
                pl.BlockSpec((HT, C), lambda i: (0, 0)),
            ],
            out_specs=pl.BlockSpec((gb, T, C), lambda i: (i, 0, 0)),
        ),
        compiler_params=pltpu.CompilerParams(
            dimension_semantics=("parallel",),
            vmem_limit_bytes=32 * 1024 * 1024,   # v5e's scoped default is only 16 MiB
        ),
    )(xg, wqkv, wo_b, bo2, hmask)
    return out.reshape(B, N, T, C)


def mha_reference(x, wq, wk, wv, wo, bo, *, heads):
    """Pure-JAX f32 reference replicating the PyTorch attention forward exactly."""
    B, N, T, C = x.shape
    Dh = C // heads
    Q = (x @ wq).reshape(B, N, T, heads, Dh).transpose(0, 3, 1, 2, 4)
    K = (x @ wk).reshape(B, N, T, heads, Dh).transpose(0, 3, 1, 2, 4)
    V = (x @ wv).reshape(B, N, T, heads, Dh).transpose(0, 3, 1, 2, 4)
    scores = jnp.einsum('bhntd,bhnsd->bhnts', Q, K) / np.sqrt(Dh)
    attn = jax.nn.softmax(scores, axis=-1)
    ctx = jnp.einsum('bhnts,bhnsd->bhntd', attn, V)
    ctx = ctx.transpose(0, 2, 3, 1, 4).reshape(B, N, T, heads * Dh)
    return ctx @ wo + bo


if __name__ == "__main__":
    # TODO(synk): the surrounding STransformer also reads adjacency CSVs from disk
    # (pd.read_csv), runs a GCN + InstanceNorm2d gating branch, builds D_S in a host
    # loop, applies dropout, LayerNorm/FFN and a sigmoid gate — host file I/O and
    # data-dependent preprocessing with no clean Pallas equivalent; only the
    # multi-head self-attention hot path is implemented here.
    B, N, T, C, heads = 2, 4, 8, 32, 4

    key = jax.random.PRNGKey(0)
    kx, kq, kk, kv, ko, kb = jax.random.split(key, 6)

    x = jax.random.normal(kx, (B, N, T, C), dtype=jnp.float32)
    wq = jax.random.normal(kq, (C, C), dtype=jnp.float32) * 0.1
    wk = jax.random.normal(kk, (C, C), dtype=jnp.float32) * 0.1
    wv = jax.random.normal(kv, (C, C), dtype=jnp.float32) * 0.1
    wo = jax.random.normal(ko, (C, C), dtype=jnp.float32) * 0.1
    bo = jax.random.normal(kb, (C,), dtype=jnp.float32) * 0.1

    out = jax.block_until_ready(mha_forward(x, wq, wk, wv, wo, bo, heads=heads))
    ref = mha_reference(x, wq, wk, wv, wo, bo, heads=heads)

    # Tolerance relaxed to 2e-2: bf16 MXU operands (f32 accumulation) plus the EUP
    # approximate reciprocal in the softmax, validated against the pure-f32 reference.
    np.testing.assert_allclose(np.asarray(out), np.asarray(ref), rtol=2e-2, atol=2e-2)
    print("KERNEL_OK")
</pallas_src>

<mosaic_0001>
module attributes {stable_mosaic.version = 11 : i64} {
  func.func @_mha_kernel(%arg0: i32, %arg1: memref<8x8x32xf32, #tpu.memory_space<vmem>>, %arg2: memref<32x96xbf16, #tpu.memory_space<vmem>>, %arg3: memref<32x32xbf16, #tpu.memory_space<vmem>>, %arg4: memref<1x32xf32, #tpu.memory_space<vmem>>, %arg5: memref<32x32xf32, #tpu.memory_space<vmem>>, %arg6: memref<8x8x32xf32, #tpu.memory_space<vmem>>) attributes {dimension_semantics = [#tpu.dimension_semantics<parallel>], iteration_bounds = array<i64: 1>, scalar_prefetch = 0 : i64, scratch_operands = 0 : i64, tpu.core_type = #tpu.core_type<tc>, window_params = [{transform_indices = @transform_0, window_bounds = array<i64: 8, 8, 32>}, {pipeline_mode = #tpu.pipeline_mode<synchronous>, transform_indices = @transform_1, window_bounds = array<i64: 32, 96>}, {pipeline_mode = #tpu.pipeline_mode<synchronous>, transform_indices = @transform_2, window_bounds = array<i64: 32, 32>}, {pipeline_mode = #tpu.pipeline_mode<synchronous>, transform_indices = @transform_3, window_bounds = array<i64: 1, 32>}, {pipeline_mode = #tpu.pipeline_mode<synchronous>, transform_indices = @transform_4, window_bounds = array<i64: 32, 32>}, {transform_indices = @transform_5, window_bounds = array<i64: 8, 8, 32>}]} {
    %c0 = arith.constant 0 : index
    %c0_0 = arith.constant 0 : index
    %c0_1 = arith.constant 0 : index
    %0 = vector.load %arg1[%c0, %c0_0, %c0_1] : memref<8x8x32xf32, #tpu.memory_space<vmem>>, vector<8x8x32xf32>
    %1 = vector.shape_cast %0 : vector<8x8x32xf32> to vector<64x32xf32>
    %2 = arith.truncf %1 : vector<64x32xf32> to vector<64x32xbf16>
    %c0_2 = arith.constant 0 : index
    %c0_3 = arith.constant 0 : index
    %3 = vector.load %arg2[%c0_2, %c0_3] : memref<32x96xbf16, #tpu.memory_space<vmem>>, vector<32x96xbf16>
    %cst = arith.constant dense<0.000000e+00> : vector<64x96xf32>
    %4 = tpu.matmul %2, %3, %cst {dimension_numbers = #tpu.dot_dimension_numbers<[1], [0], [0], [1], [0, 0, 1, 1], [], []>} : vector<64x32xbf16>, vector<32x96xbf16>, vector<64x96xf32> -> vector<64x96xf32>
    %5 = vector.extract_strided_slice %4 {offsets = [0, 0], sizes = [64, 32], strides = [1, 1]} : vector<64x96xf32> to vector<64x32xf32>
    %6 = vector.shape_cast %5 : vector<64x32xf32> to vector<8x8x32xf32>
    %7 = vector.extract_strided_slice %4 {offsets = [0, 32], sizes = [64, 32], strides = [1, 1]} : vector<64x96xf32> to vector<64x32xf32>
    %8 = vector.shape_cast %7 : vector<64x32xf32> to vector<8x8x32xf32>
    %9 = vector.extract_strided_slice %4 {offsets = [0, 64], sizes = [64, 32], strides = [1, 1]} : vector<64x96xf32> to vector<64x32xf32>
    %10 = vector.shape_cast %9 : vector<64x32xf32> to vector<8x8x32xf32>
    %c0_4 = arith.constant 0 : index
    %c0_5 = arith.constant 0 : index
    %11 = vector.load %arg5[%c0_4, %c0_5] : memref<32x32xf32, #tpu.memory_space<vmem>>, vector<32x32xf32>
    %12 = tpu.concatenate %6, %6, %6, %6 in 1 : vector<8x8x32xf32>, vector<8x8x32xf32>, vector<8x8x32xf32>, vector<8x8x32xf32> -> vector<8x32x32xf32>
    %13 = vector.shape_cast %11 : vector<32x32xf32> to vector<1x32x32xf32>
    %14 = vector.broadcast %13 : vector<1x32x32xf32> to vector<8x32x32xf32>
    %15 = arith.mulf %12, %14 : vector<8x32x32xf32>
    %16 = arith.truncf %15 : vector<8x32x32xf32> to vector<8x32x32xbf16>
    %17 = arith.truncf %8 : vector<8x8x32xf32> to vector<8x8x32xbf16>
    %18 = arith.truncf %10 : vector<8x8x32xf32> to vector<8x8x32xbf16>
    "tpu.trace_start"() <{level = 10 : i32, message = "guc,gsc->gus"}> : () -> ()
    %cst_6 = arith.constant dense<0.000000e+00> : vector<8x32x8xf32>
    %19 = tpu.matmul %16, %17, %cst_6 {dimension_numbers = #tpu.dot_dimension_numbers<[2], [2], [1], [1], [0, 0, 0, 1, 1, 1], [0], [0]>} : vector<8x32x32xbf16>, vector<8x8x32xbf16>, vector<8x32x8xf32> -> vector<8x32x8xf32>
    "tpu.trace_stop"() : () -> ()
    %cst_7 = arith.constant 0.353553385 : f32
    %20 = vector.broadcast %cst_7 : f32 to vector<8x32x8xf32>
    %21 = arith.mulf %19, %20 : vector<8x32x8xf32>
    %cst_8 = arith.constant dense<0xFF800000> : vector<8x32xf32>
    %22 = vector.multi_reduction <maximumf>, %21, %cst_8 [2] : vector<8x32x8xf32> to vector<8x32xf32>
    %23 = vector.shape_cast %22 : vector<8x32xf32> to vector<8x32x1xf32>
    %24 = vector.broadcast %23 : vector<8x32x1xf32> to vector<8x32x8xf32>
    %25 = arith.subf %21, %24 : vector<8x32x8xf32>
    %26 = math.exp %25 : vector<8x32x8xf32>
    %cst_9 = arith.constant dense<0.000000e+00> : vector<8x32xf32>
    %27 = vector.multi_reduction <add>, %26, %cst_9 [2] : vector<8x32x8xf32> to vector<8x32xf32>
    %28 = vector.shape_cast %27 : vector<8x32xf32> to vector<8x32x1xf32>
    %29 = tpu.reciprocal %28 {approx = true} : vector<8x32x1xf32> -> vector<8x32x1xf32>
    %30 = vector.broadcast %29 : vector<8x32x1xf32> to vector<8x32x8xf32>
    %31 = arith.mulf %26, %30 : vector<8x32x8xf32>
    %32 = arith.truncf %31 : vector<8x32x8xf32> to vector<8x32x8xbf16>
    "tpu.trace_start"() <{level = 10 : i32, message = "gus,gsc->guc"}> : () -> ()
    %cst_10 = arith.constant dense<0.000000e+00> : vector<8x32x32xf32>
    %33 = tpu.matmul %32, %18, %cst_10 {dimension_numbers = #tpu.dot_dimension_numbers<[2], [1], [1], [2], [0, 0, 0, 1, 1, 2], [0], [0]>} : vector<8x32x8xbf16>, vector<8x8x32xbf16>, vector<8x32x32xf32> -> vector<8x32x32xf32>
    "tpu.trace_stop"() : () -> ()
    %34 = vector.shape_cast %11 : vector<32x32xf32> to vector<1x32x32xf32>
    %35 = vector.broadcast %34 : vector<1x32x32xf32> to vector<8x32x32xf32>
    %36 = arith.mulf %33, %35 : vector<8x32x32xf32>
    %37 = vector.extract_strided_slice %36 {offsets = [0, 0, 0], sizes = [8, 8, 32], strides = [1, 1, 1]} : vector<8x32x32xf32> to vector<8x8x32xf32>
    %38 = vector.extract_strided_slice %36 {offsets = [0, 8, 0], sizes = [8, 8, 32], strides = [1, 1, 1]} : vector<8x32x32xf32> to vector<8x8x32xf32>
    %39 = arith.addf %37, %38 : vector<8x8x32xf32>
    %40 = vector.extract_strided_slice %36 {offsets = [0, 16, 0], sizes = [8, 8, 32], strides = [1, 1, 1]} : vector<8x32x32xf32> to vector<8x8x32xf32>
    %41 = arith.addf %39, %40 : vector<8x8x32xf32>
    %42 = vector.extract_strided_slice %36 {offsets = [0, 24, 0], sizes = [8, 8, 32], strides = [1, 1, 1]} : vector<8x32x32xf32> to vector<8x8x32xf32>
    %43 = arith.addf %41, %42 : vector<8x8x32xf32>
    %44 = vector.shape_cast %43 : vector<8x8x32xf32> to vector<64x32xf32>
    %45 = arith.truncf %44 : vector<64x32xf32> to vector<64x32xbf16>
    %c0_11 = arith.constant 0 : index
    %c0_12 = arith.constant 0 : index
    %46 = vector.load %arg3[%c0_11, %c0_12] : memref<32x32xbf16, #tpu.memory_space<vmem>>, vector<32x32xbf16>
    %cst_13 = arith.constant dense<0.000000e+00> : vector<64x32xf32>
    %47 = tpu.matmul %45, %46, %cst_13 {dimension_numbers = #tpu.dot_dimension_numbers<[1], [0], [0], [1], [0, 0, 1, 1], [], []>} : vector<64x32xbf16>, vector<32x32xbf16>, vector<64x32xf32> -> vector<64x32xf32>
    %c0_14 = arith.constant 0 : index
    %c0_15 = arith.constant 0 : index
    %48 = vector.load %arg4[%c0_14, %c0_15] : memref<1x32xf32, #tpu.memory_space<vmem>>, vector<1x32xf32>
    %49 = vector.broadcast %48 : vector<1x32xf32> to vector<64x32xf32>
    %50 = arith.addf %47, %49 : vector<64x32xf32>
    %51 = vector.shape_cast %50 : vector<64x32xf32> to vector<8x8x32xf32>
    %c0_16 = arith.constant 0 : index
    %c0_17 = arith.constant 0 : index
    %c0_18 = arith.constant 0 : index
    %52 = vector.load %arg6[%c0_16, %c0_17, %c0_18] : memref<8x8x32xf32, #tpu.memory_space<vmem>>, vector<8x8x32xf32>
    tpu.vector_store %arg6[%c0_16, %c0_17, %c0_18], %51 {strides = array<i32>} : memref<8x8x32xf32, #tpu.memory_space<vmem>>, vector<8x8x32xf32>,
    return
  }
  func.func @transform_0(%arg0: i32) -> (i32, i32, i32) {
    %c0_i32 = arith.constant 0 : i32
    %c0_i32_0 = arith.constant 0 : i32
    %c0_i32_1 = arith.constant 0 : i32
    return %arg0, %c0_i32, %c0_i32_0 : i32, i32, i32
  }
  func.func @transform_1(%arg0: i32) -> (i32, i32) {
    %c0_i32 = arith.constant 0 : i32
    %c0_i32_0 = arith.constant 0 : i32
    %c0_i32_1 = arith.constant 0 : i32
    return %c0_i32, %c0_i32_0 : i32, i32
  }
  func.func @transform_2(%arg0: i32) -> (i32, i32) {
    %c0_i32 = arith.constant 0 : i32
    %c0_i32_0 = arith.constant 0 : i32
    %c0_i32_1 = arith.constant 0 : i32
    return %c0_i32, %c0_i32_0 : i32, i32
  }
  func.func @transform_3(%arg0: i32) -> (i32, i32) {
    %c0_i32 = arith.constant 0 : i32
    %c0_i32_0 = arith.constant 0 : i32
    %c0_i32_1 = arith.constant 0 : i32
    return %c0_i32, %c0_i32_0 : i32, i32
  }
  func.func @transform_4(%arg0: i32) -> (i32, i32) {
    %c0_i32 = arith.constant 0 : i32
    %c0_i32_0 = arith.constant 0 : i32
    %c0_i32_1 = arith.constant 0 : i32
    return %c0_i32, %c0_i32_0 : i32, i32
  }
  func.func @transform_5(%arg0: i32) -> (i32, i32, i32) {
    %c0_i32 = arith.constant 0 : i32
    %c0_i32_0 = arith.constant 0 : i32
    %c0_i32_1 = arith.constant 0 : i32
    return %arg0, %c0_i32, %c0_i32_0 : i32, i32, i32
  }
}

</mosaic_0001>

<bundles_post_ra>
// kernel: tpu_custom_call.1
= control target key start
LH: loop header
LB: loop body
LE: loop exit
PB: predicated region body
PF: predicated region fallthrough
CT: control target
= control target key end

     0   :  { %10 = vsyncpa [#allocation3], 0  ;;  %s3002_s0 = inlined_call_operand.hbm [shape: f32[8,8,32], index: 0, kind: input, shape index: {}]   ;;  %s3003_s1 = inlined_call_operand.hbm [shape: bf16[32,96], index: 1, kind: input, shape index: {}]   ;;  %s3004_s2 = inlined_call_operand.hbm [shape: bf16[32,32], index: 2, kind: input, shape index: {}]   ;;  %s3005_s3 = inlined_call_operand.vmem [shape: f32[1,32], index: 3, kind: input, shape index: {}]   ;;  %s3006_s4 = inlined_call_operand.hbm [shape: f32[32,32], index: 4, kind: input, shape index: {}]   ;;  %s3007_s5 = inlined_call_operand.hbm [shape: f32[8,8,32], index: 5, kind: output, shape index: {}]  }
   0x1   :  { %11 = vsyncpa [#allocation6], 0 }
   0x2   :  { %12 = vsyncpa [#allocation9], 0 }
   0x3   :  { %13 = vsyncpa [#allocation4], 0  ;;  %s2309_s18 = smov [#allocation5]   ;;  %s2191_s22 = scalar_lea.hbm %s3003_s1, 256 }
   0x4   :  { %s31_s19 = sshll.u32 %s2309_s18, 4  ;;  %p2192_p0 = scmp.ne.s32.totalorder %s3003_s1, %s2191_s22  ;;  %s32_s19 = int_to_ptr.vmem [resolvable:$true] %s31_s19 }
   0x5   :  { %p2195_p1 = scmp.lt.u32.totalorder %s2191_s22, %s3003_s1 }
   0x7   :  { %p2197_p2 = pnand %p2195_p1, %p2192_p0 }
   0x9   :  { %2200 = shalt.err (!%p2197_p2)
}
   0xa   :  { %s2201_s27 = scalar_lea.vmem %s32_s19, 256  ;;  %p2206_p4 = scmp.lt.s32.totalorder %s32_s19, %s32_s19 }
   0xb   :  { %p2202_p3 = scmp.ne.s32.totalorder %s32_s19, %s2201_s27  ;;  %p2207_p5 = scmp.lt.s32.totalorder %s2201_s27, %s2201_s27 }
   0xd   :  { %p2208_p6 = por %p2207_p5, %p2206_p4 }
   0xf   :  { %p2209_p7 = pnand %p2208_p6, %p2202_p3 }
  0x11   :  { %2212 = shalt.err (!%p2209_p7)
}
  0x12   :  { %s2310_s28 = smov 64   ;;  %s2311_s29 = smov 4  }
  0x13   :  { %37 = dma.hbm_to_vmem [thread:$0]  %s3003_s1, 256, %s32_s19, [#allocation6], %s2310_s28, %s2310_s28, %s2311_s29  }
  0x14   :  { %s2312_s7 = smov [#allocation2]   ;;  %s2213_s11 = scalar_lea.hbm %s3002_s0, 1024 }
  0x15   :  { %s19_s8 = sshll.u32 %s2312_s7, 4  ;;  %p2214_p8 = scmp.ne.s32.totalorder %s3002_s0, %s2213_s11  ;;  %s20_s8 = int_to_ptr.vmem [resolvable:$true] %s19_s8 }
  0x16   :  { %p2217_p9 = scmp.lt.u32.totalorder %s2213_s11, %s3002_s0 }
  0x18   :  { %p2219_p10 = pnand %p2217_p9, %p2214_p8 }
  0x1a   :  { %2222 = shalt.err (!%p2219_p10)
}
  0x1b   :  { %s2223_s16 = scalar_lea.vmem %s20_s8, 1024  ;;  %p2228_p12 = scmp.lt.s32.totalorder %s20_s8, %s20_s8 }
  0x1c   :  { %p2224_p11 = scmp.ne.s32.totalorder %s20_s8, %s2223_s16  ;;  %p2229_p13 = scmp.lt.s32.totalorder %s2223_s16, %s2223_s16 }
  0x1e   :  { %p2230_p0 = por %p2229_p13, %p2228_p12 }
  0x20   :  { %p2231_p1 = pnand %p2230_p0, %p2224_p11 }
  0x22   :  { %2234 = shalt.err (!%p2231_p1)
}
  0x23   :  { %s2313_s1 = smov 128   ;;  %s2314_s17 = smov 8  }
  0x24   :  { %25 = dma.hbm_to_vmem [thread:$0]  %s3002_s0, 1024, %s20_s8, [#allocation3], %s2313_s1, %s2313_s1, %s2314_s17  }
  0x25   :  { %s2315_s20 = smov [#allocation7]   ;;  %s2316_s22 = smov [#allocation8]  }
  0x26   :  { %s43_s21 = sshll.u32 %s2315_s20, 4  ;;  %s57_s23 = sshll.u32 %s2316_s22, 4  ;;  %s44_s21 = int_to_ptr.vmem [resolvable:$true] %s43_s21  ;;  %s2379_s23 = int_to_ptr.vmem [resolvable:$true] %s57_s23 }
  0x27   :  { %s2235_s26 = scalar_lea.hbm %s3004_s2, 256 }
  0x28   :  { %p2236_p2 = scmp.ne.s32.totalorder %s3004_s2, %s2235_s26  ;;  %p2239_p3 = scmp.lt.u32.totalorder %s2235_s26, %s3004_s2 }
  0x2a   :  { %p2241_p4 = pnand %p2239_p3, %p2236_p2 }
  0x2c   :  { %2244 = shalt.err (!%p2241_p4)
}
  0x2d   :  { %s2245_s0 = scalar_lea.vmem %s44_s21, 256  ;;  %p2250_p6 = scmp.lt.s32.totalorder %s44_s21, %s44_s21 }
  0x2e   :  { %p2246_p5 = scmp.ne.s32.totalorder %s44_s21, %s2245_s0  ;;  %p2251_p7 = scmp.lt.s32.totalorder %s2245_s0, %s2245_s0 }
  0x30   :  { %p2252_p8 = por %p2251_p7, %p2250_p6 }
  0x32   :  { %p2253_p9 = pnand %p2252_p8, %p2246_p5 }
  0x34   :  { %2256 = shalt.err (!%p2253_p9)
}
  0x35   :  { %49 = dma.hbm_to_vmem [thread:$0]  %s3004_s2, 256, %s44_s21, [#allocation6], %s2310_s28, %s2310_s28, %s2311_s29  }
  0x36   :  { %s2257_s12 = scalar_lea.hbm %s3006_s4, 512 }
  0x37   :  { %p2258_p10 = scmp.ne.s32.totalorder %s3006_s4, %s2257_s12  ;;  %p2261_p11 = scmp.lt.u32.totalorder %s2257_s12, %s3006_s4 }
  0x39   :  { %p2263_p12 = pnand %p2261_p11, %p2258_p10 }
  0x3b   :  { %2266 = shalt.err (!%p2263_p12)
}
  0x3c   :  { %s2267_s18 = scalar_lea.vmem %s2379_s23, 512  ;;  %p2272_p0 = scmp.lt.s32.totalorder %s2379_s23, %s2379_s23 }
  0x3d   :  { %p2268_p13 = scmp.ne.s32.totalorder %s2379_s23, %s2267_s18  ;;  %p2273_p1 = scmp.lt.s32.totalorder %s2267_s18, %s2267_s18 }
  0x3f   :  { %p2274_p2 = por %p2273_p1, %p2272_p0 }
  0x41   :  { %p2275_p3 = pnand %p2274_p2, %p2268_p13 }
  0x43   :  { %2278 = shalt.err (!%p2275_p3)
}
  0x44   :  { %63 = dma.hbm_to_vmem [thread:$0]  %s3006_s4, 512, %s2379_s23, [#allocation9], %s2313_s1, %s2313_s1, %s2314_s17  }
  0x45   :  { %2301 = dma.done.wait [#allocation3], 1024  }
  0x46   :  { %2302 = vsyncadd [#allocation3], 4294966272 }
  0x47   :  { %2303 = dma.done.wait [#allocation6], 512  }
  0x48   :  { %2304 = vsyncadd [#allocation6], 4294966784 }
  0x49   :  { %2305 = dma.done.wait [#allocation9], 512  }
  0x4a   :  { %2306 = vsyncadd [#allocation9], 4294966784  ;;  %v2055_v0 = vld [vmem:[#allocation5] sm:$0xff]   ;;  %v2056_v1 = vld [vmem:[#allocation5 + $0x8] sm:$0xff]   ;;  %vm105_vm0 = vcmask 261120   ;;  %s2317_s4 = smov 96  }
  0x4b   :  { %1905 = vmatprep.subr.bf16.mxu0 %v2055_v0  ;;  %2025 = vmatprep.subr.bf16.mxu1 %v2055_v0  ;;  %v77_v2 = vld [vmem:[#allocation2] sm:$0xff]  ;;  %v78_v3 = vld [vmem:[#allocation2 + $0x8] sm:$0xff]  ;;  %v79_v4 = vld [vmem:[#allocation2 + $0x10] sm:$0xff]  ;;  %vm1140_vm1 = vcmask 1043456   ;;  %vm763_vm2 = vcmask 64512  }
  0x4c   :  { %1906 = vmatpush3.bf16.msra.mxu0 %v2055_v0  ;;  %2027 = vmatpush3.bf16.msra.mxu1 %v2055_v0  ;;  %v85_v5 = vpack.c.bf16 %v78_v3, %v77_v2  ;;  %v80_v6 = vld [vmem:[#allocation2 + $0x18] sm:$0xff]  ;;  %v81_v7 = vld [vmem:[#allocation2 + $0x20] sm:$0xff]  ;;  %v82_v8 = vld [vmem:[#allocation2 + $0x28] sm:$0xff] }
  0x4d   :  { %1907 = vmatprep.subr.bf16.mxu0 %v2056_v1  ;;  %2026 = vmatprep.subr.bf16.mxu1 %v2056_v1  ;;  %v87_v9 = vpack.c.bf16 %v82_v8, %v81_v7  ;;  %v83_v10 = vld [vmem:[#allocation2 + $0x30] sm:$0xff]  ;;  %v84_v11 = vld [vmem:[#allocation2 + $0x38] sm:$0xff]  ;;  %v86_v12 = vpack.c.bf16 %v80_v6, %v79_v4  ;;  %v2420_v15 = vld [vmem:[#allocation8] sm:$0xff] }
  0x4e   :  { %1909 = vmatprep.mubr.msk.bf16.mxu0 %vm105_vm0, %v85_v5  ;;  %v88_v13 = vpack.c.bf16 %v84_v11, %v83_v10  ;;  %v2422_v16 = vld [vmem:[#allocation8 + $0x8] sm:$0xff]  ;;  %v2470_v38 = vld [vmem:[#allocation8 + $0x10] sm:$0xff]  ;;  %v2472_v39 = vld [vmem:[#allocation8 + $0x18] sm:$0xff] }
  0x4f   :  { %1913 = vmatprep.mubr.msk.bf16.mxu1 %vm105_vm0, %v87_v9 }
  0x50   :  { %1908 = vmatpush3.bf16.msra.mxu0 %v2056_v1  ;;  %2028 = vmatpush3.bf16.msra.mxu1 %v2056_v1 }
  0x53   :  { %1910 = vmatmul.mubr.msk.bf16.vlgmr.msra.gmra.mrb[0].mxu0 %vm105_vm0, %v86_v12  ;;  %1914 = vmatmul.mubr.msk.bf16.vlgmr.msra.gmra.mrb[0].mxu1 %vm105_vm0, %v88_v13 }
 0x126   :  { %v1911_v14 = vpop.f32.mrb[0].mxu0  ;;  %v2424_v17 = vpop.f32.mrb[0].mxu1 }
 0x127   :  { %v152_v18 = vpop.f32.mrb[1].mxu0  ;;  %v2426_v19 = vpop.f32.mrb[1].mxu1  ;;  %v195_v22 = vmul.f32 %v1911_v14, %v2420_v15  ;;  %v196_v23 = vmul.f32 %v1911_v14, %v2422_v16  ;;  %v237_v28 = vpack.c.bf16 %v1911_v14, %v1911_v14  ;;  %v2462_v37 = vpack.c.bf16 %v2424_v17, %v2424_v17 }
 0x128   :  { %v2428_v20 = vpop.f32.mrb[2].mxu0  ;;  %v2430_v21 = vpop.f32.mrb[2].mxu1  ;;  %v187_v26 = vmul.f32 %v2420_v15, %v152_v18  ;;  %v188_v27 = vmul.f32 %v2422_v16, %v152_v18  ;;  %v235_v29 = vpack.c.bf16 %v152_v18, %v152_v18  ;;  %v2452_v35 = vpack.c.bf16 %v2426_v19, %v2426_v19 }
 0x129   :  { %v2434_v24 = vpop.f32.mrb[3].mxu0  ;;  %v2436_v25 = vpop.f32.mrb[3].mxu1  ;;  %366 = vrot.lane.b32.xlu1 %v237_v28, %s2317_s4  ;;  %v223_v30 = vpack.c.bf16 %v196_v23, %v195_v22  ;;  %v238_v32 = vpack.c.bf16 %v2428_v20, %v2428_v20  ;;  %v2457_v36 = vpack.c.bf16 %v2430_v21, %v2430_v21  ;;  %v197_v44 = vmul.f32 %v1911_v14, %v2470_v38 }
 0x12a   :  { %244 = vrot.lane.b32.xlu0 %v235_v29, %s2317_s4  ;;  %v219_v31 = vpack.c.bf16 %v188_v27, %v187_v26  ;;  %v236_v33 = vpack.c.bf16 %v2434_v24, %v2434_v24  ;;  %v2448_v34 = vpack.c.bf16 %v2436_v25, %v2436_v25  ;;  %v198_v45 = vmul.f32 %v1911_v14, %v2472_v39 }
 0x12b   :  { %1931 = vmatprep.mubr.msk.bf16.mxu0 %vm105_vm0, %v223_v30  ;;  %v189_v46 = vmul.f32 %v2470_v38, %v152_v18  ;;  %v190_v47 = vmul.f32 %v2472_v39, %v152_v18  ;;  %v203_v48 = vmul.f32 %v2420_v15, %v2426_v19  ;;  %v204_v49 = vmul.f32 %v2422_v16, %v2426_v19 }
 0x12c   :  { %1919 = vmatprep.mubr.msk.bf16.mxu1 %vm105_vm0, %v219_v31  ;;  %v191_v50 = vmul.f32 %v2420_v15, %v2434_v24  ;;  %v192_v51 = vmul.f32 %v2422_v16, %v2434_v24  ;;  %v224_v53 = vpack.c.bf16 %v198_v45, %v197_v44  ;;  %v193_v61 = vmul.f32 %v2470_v38, %v2434_v24 }
 0x12d   :  { %427 = vrot.lane.b32.xlu1 %v238_v32, %s2317_s4  ;;  %v220_v55 = vpack.c.bf16 %v190_v47, %v189_v46  ;;  %v227_v56 = vpack.c.bf16 %v204_v49, %v203_v48  ;;  %v194_v62 = vmul.f32 %v2472_v39, %v2434_v24  ;;  %v199_v0 = vmul.f32 %v2428_v20, %v2420_v15 }
 0x12e   :  { %305 = vrot.lane.b32.xlu0 %v236_v33, %s2317_s4  ;;  %v221_v57 = vpack.c.bf16 %v192_v51, %v191_v50  ;;  %v200_v1 = vmul.f32 %v2428_v20, %v2422_v16  ;;  %v205_v2 = vmul.f32 %v2470_v38, %v2426_v19  ;;  %v206_v3 = vmul.f32 %v2472_v39, %v2426_v19 }
 0x12f   :  { %v211_v4 = vmul.f32 %v2424_v17, %v2420_v15  ;;  %v212_v5 = vmul.f32 %v2424_v17, %v2422_v16  ;;  %v222_v8 = vpack.c.bf16 %v194_v62, %v193_v61  ;;  %v201_v14 = vmul.f32 %v2428_v20, %v2470_v38 }
 0x130   :  { %v225_v9 = vpack.c.bf16 %v200_v1, %v199_v0  ;;  %v228_v10 = vpack.c.bf16 %v206_v3, %v205_v2  ;;  %v202_v18 = vmul.f32 %v2428_v20, %v2472_v39  ;;  %v207_v19 = vmul.f32 %v2420_v15, %v2436_v25 }
 0x131   :  { %549 = vrot.lane.b32.xlu1 %v2448_v34, %s2317_s4  ;;  %v231_v13 = vpack.c.bf16 %v212_v5, %v211_v4  ;;  %v208_v22 = vmul.f32 %v2422_v16, %v2436_v25  ;;  %v213_v24 = vmul.f32 %v2424_v17, %v2470_v38  ;;  %v214_v20 = vmul.f32 %v2424_v17, %v2472_v39 }
 0x132   :  { %488 = vrot.lane.b32.xlu0 %v2452_v35, %s2317_s4  ;;  %v226_v26 = vpack.c.bf16 %v202_v18, %v201_v14  ;;  %v209_v30 = vmul.f32 %v2470_v38, %v2436_v25  ;;  %v210_v31 = vmul.f32 %v2472_v39, %v2436_v25 }
 0x133   :  { %v229_v27 = vpack.c.bf16 %v208_v22, %v207_v19 }
 0x135   :  { %671 = vrot.lane.b32.xlu1 %v2457_v36, %s2317_s4 }
 0x136   :  { %610 = vrot.lane.b32.xlu0 %v2462_v37, %s2317_s4 }
 0x139   :  { %1132 = vrot.lane.b32.xlu1 %v235_v29, %s2310_s28 }
 0x13a   :  { %1193 = vrot.lane.b32.xlu0 %v236_v33, %s2310_s28  ;;  %v216_v33 = vmul.f32 %v2430_v21, %v2422_v16  ;;  %v218_v16 = vmul.f32 %v2430_v21, %v2472_v39 }
 0x13d   :  { %1253 = vrot.lane.b32.xlu1 %v237_v28, %s2310_s28  ;;  %v232_v28 = vpack.c.bf16 %v214_v20, %v213_v24 }
 0x141   :  { %1313 = vrot.lane.b32.xlu1 %v238_v32, %s2310_s28  ;;  %v215_v32 = vmul.f32 %v2430_v21, %v2420_v15  ;;  %v217_v15 = vmul.f32 %v2430_v21, %v2470_v38 }
 0x143   :  { %v233_v25 = vpack.c.bf16 %v216_v33, %v215_v32  ;;  %v234_v44 = vpack.c.bf16 %v218_v16, %v217_v15 }
 0x19b   :  { %v367_v40 = vpop.permute.xlu1 %366 }
 0x19c   :  { %v375_v41 = vsel %vm105_vm0, %v367_v40, 0  ;;  %2031 = vmatprep.subr.msk.bf16.mxu0 %vm105_vm0, %v367_v40  ;;  %v245_v42 = vpop.permute.xlu0 %244 }
 0x19d   :  { %v253_v43 = vsel %vm105_vm0, %v245_v42, 0  ;;  %2029 = vmatprep.subr.msk.bf16.mxu1 %vm105_vm0, %v245_v42  ;;  %1930 = vmatpush3.bf16.xpose.msra.mxu0 %v375_v41  ;;  %v230_v41 = vpack.c.bf16 %v210_v31, %v209_v30 }
 0x19e   :  { %1918 = vmatpush3.bf16.xpose.msra.mxu1 %v253_v43 }
 0x19f   :  { %v428_v52 = vpop.permute.xlu1 %427 }
 0x1a0   :  { %v306_v54 = vpop.permute.xlu0 %305  ;;  %v436_v11 = vsel %vm105_vm0, %v428_v52, 0 }
 0x1a1   :  { %2030 = vmatprep.subr.msk.bf16.mxu1 %vm105_vm0, %v306_v54  ;;  %v314_v58 = vsel %vm105_vm0, %v306_v54, 0 }
 0x1a3   :  { %v550_v59 = vpop.permute.xlu1 %549 }
 0x1a4   :  { %1932 = vmatmul.mubr.msk.bf16.vlgmr.msra.gmra.mrb[4].mxu0 %vm105_vm0, %v224_v53  ;;  %v489_v60 = vpop.permute.xlu0 %488  ;;  %v558_v29 = vsel %vm105_vm0, %v550_v59, 0 }
 0x1a5   :  { %1920 = vmatmul.mubr.msk.bf16.vlgmr.msra.gmra.mrb[4].mxu1 %vm105_vm0, %v220_v55  ;;  %1943 = vmatprep.mubr.msk.bf16.mxu0 %vm105_vm0, %v227_v56  ;;  %v497_v63 = vsel %vm105_vm0, %v489_v60, 0 }
 0x1a6   :  { %1924 = vmatpush3.bf16.xpose.msra.mxu1 %v314_v58  ;;  %1925 = vmatprep.mubr.msk.bf16.mxu1 %vm105_vm0, %v221_v57 }
 0x1a7   :  { %2033 = vmatprep.subr.msk.bf16.mxu0 %vm105_vm0, %v489_v60  ;;  %2032 = vmatprep.subr.msk.bf16.mxu1 %vm105_vm0, %v428_v52  ;;  %v672_v6 = vpop.permute.xlu1 %671 }
 0x1a8   :  { %1942 = vmatpush3.bf16.xpose.msra.mxu0 %v497_v63  ;;  %v611_v7 = vpop.permute.xlu0 %610  ;;  %v680_v42 = vsel %vm105_vm0, %v672_v6, 0 }
 0x1a9   :  { %2035 = vmatprep.subr.msk.bf16.mxu0 %vm105_vm0, %v611_v7  ;;  %v619_v12 = vsel %vm105_vm0, %v611_v7, 0 }
 0x1ab   :  { %v1133_v23 = vpop.permute.xlu1 %1132 }
 0x1ac   :  { %v1142_v17 = vsel %vm1140_vm1, %v1133_v23, 0  ;;  %v1194_v43 = vpop.permute.xlu0 %1193 }
 0x1ad   :  { %1926 = vmatmul.mubr.msk.bf16.vlgmr.msra.gmra.mrb[8].mxu1 %vm105_vm0, %v222_v8  ;;  %v1202_v45 = vsel %vm1140_vm1, %v1194_v43, 0 }
 0x1ae   :  { %1936 = vmatpush3.bf16.xpose.msra.mxu1 %v436_v11  ;;  %1937 = vmatprep.mubr.msk.bf16.mxu1 %vm105_vm0, %v225_v9 }
 0x1af   :  { %1944 = vmatmul.mubr.msk.bf16.vlgmr.msra.gmra.mrb[8].mxu0 %vm105_vm0, %v228_v10  ;;  %2034 = vmatprep.subr.msk.bf16.mxu1 %vm105_vm0, %v550_v59  ;;  %v2550_v40 = vpop.permute.xlu1 %1253 }
 0x1b0   :  { %1954 = vmatpush3.bf16.xpose.msra.mxu0 %v619_v12  ;;  %1955 = vmatprep.mubr.msk.bf16.mxu0 %vm105_vm0, %v231_v13 }
 0x1b1   :  { %2037 = vmatprep.subr.msk.bf16.mxu0 %vm1140_vm1, %v1133_v23 }
 0x1b3   :  { %v2564_v46 = vpop.permute.xlu1 %1313 }
 0x1b5   :  { %1938 = vmatmul.mubr.msk.bf16.vlgmr.msra.gmra.mrb[12].mxu1 %vm105_vm0, %v226_v26 }
 0x1b6   :  { %1948 = vmatpush3.bf16.xpose.msra.mxu1 %v558_v29  ;;  %1949 = vmatprep.mubr.msk.bf16.mxu1 %vm105_vm0, %v229_v27 }
 0x1b7   :  { %1956 = vmatmul.mubr.msk.bf16.vlgmr.msra.gmra.mrb[12].mxu0 %vm105_vm0, %v232_v28  ;;  %2036 = vmatprep.subr.msk.bf16.mxu1 %vm105_vm0, %v672_v6 }
 0x1b8   :  { %1966 = vmatpush3.bf16.msra.mxu0 %v1142_v17 }
 0x1b9   :  { %2039 = vmatprep.subr.msk.bf16.mxu0 %vm1140_vm1, %v2550_v40 }
 0x1bd   :  { %1950 = vmatmul.mubr.msk.bf16.vlgmr.msra.gmra.mrb[16].mxu1 %vm105_vm0, %v230_v41 }
 0x1be   :  { %1960 = vmatpush3.bf16.xpose.msra.mxu1 %v680_v42  ;;  %1961 = vmatprep.mubr.msk.bf16.mxu1 %vm105_vm0, %v233_v25 }
 0x1bf   :  { %2038 = vmatprep.subr.msk.bf16.mxu1 %vm1140_vm1, %v1194_v43 }
 0x1c5   :  { %1962 = vmatmul.mubr.msk.bf16.vlgmr.msra.gmra.mrb[20].mxu1 %vm105_vm0, %v234_v44 }
 0x1c6   :  { %1972 = vmatpush3.bf16.msra.mxu1 %v1202_v45 }
 0x1c7   :  { %2040 = vmatprep.subr.msk.bf16.mxu1 %vm1140_vm1, %v2564_v46 }
 0x277   :  { %v1933_v47 = vpop.f32.mrb[4].mxu0 }
 0x278   :  { %v2568_v48 = vmul.f32 0.35355338, %v1933_v47  ;;  %v1921_v38 = vpop.f32.mrb[4].mxu1  ;;  %v411_v49 = vpop.f32.mrb[5].mxu0 }
 0x279   :  { %v289_v21 = vpop.f32.mrb[5].mxu1  ;;  %v1934_v39 = vpop.f32.mrb[6].mxu0  ;;  %v2572_v53 = vmul.f32 0.35355338, %v1921_v38  ;;  %v2580_v58 = vmul.f32 0.35355338, %v411_v49 }
 0x27a   :  { %v2570_v50 = vmul.f32 0.35355338, %v289_v21  ;;  %v1922_v51 = vpop.f32.mrb[6].mxu1  ;;  %v414_v52 = vpop.f32.mrb[7].mxu0  ;;  %v794_v55 = vsel %vm763_vm2, %v2568_v48, -inf }
 0x27b   :  { %v292_v54 = vpop.f32.mrb[7].mxu1  ;;  %v2576_v56 = vmul.f32 0.35355338, %v1934_v39  ;;  %795 = vmax.xlane.f32.xlu1 %v794_v55  ;;  %v770_v59 = vsel %vm763_vm2, %v2572_v53, -inf  ;;  %v2584_v60 = vmul.f32 0.35355338, %v1922_v51 }
 0x27c   :  { %v764_v57 = vsel %vm763_vm2, %v2570_v50, -inf  ;;  %v2588_v2 = vmul.f32 0.35355338, %v292_v54  ;;  %v788_v4 = vsel %vm763_vm2, %v2580_v58, -inf  ;;  %v2592_v6 = vmul.f32 0.35355338, %v414_v52 }
 0x27d   :  { %765 = vmax.xlane.f32.xlu0 %v764_v57  ;;  %v797_v62 = vsel %vm763_vm2, %v2576_v56, -inf  ;;  %v773_v8 = vsel %vm763_vm2, %v2584_v60, -inf }
 0x27e   :  { %v767_v11 = vsel %vm763_vm2, %v2588_v2, -inf  ;;  %v791_v14 = vsel %vm763_vm2, %v2592_v6, -inf }
 0x27f   :  { %771 = vmax.xlane.f32.xlu1 %v770_v59 }
 0x280   :  { %v1927_v61 = vpop.f32.mrb[8].mxu1 }
 0x281   :  { %798 = vmax.xlane.f32.xlu0 %v797_v62  ;;  %v350_v63 = vpop.f32.mrb[9].mxu1  ;;  %v2604_v23 = vmul.f32 0.35355338, %v1927_v61 }
 0x282   :  { %v1945_v0 = vpop.f32.mrb[8].mxu0  ;;  %v1928_v1 = vpop.f32.mrb[10].mxu1  ;;  %v2600_v12 = vmul.f32 0.35355338, %v350_v63 }
 0x283   :  { %v533_v3 = vpop.f32.mrb[9].mxu0  ;;  %v353_v5 = vpop.f32.mrb[11].mxu1  ;;  %789 = vmax.xlane.f32.xlu1 %v788_v4  ;;  %v2596_v10 = vmul.f32 0.35355338, %v1945_v0  ;;  %v782_v17 = vsel %vm763_vm2, %v2604_v23, -inf }
 0x284   :  { %v1946_v7 = vpop.f32.mrb[10].mxu0  ;;  %v776_v29 = vsel %vm763_vm2, %v2600_v12, -inf  ;;  %v2612_v31 = vmul.f32 0.35355338, %v533_v3  ;;  %v2616_v32 = vmul.f32 0.35355338, %v1928_v1 }
 0x285   :  { %v536_v9 = vpop.f32.mrb[11].mxu0  ;;  %774 = vmax.xlane.f32.xlu0 %v773_v8  ;;  %v818_v20 = vsel %vm763_vm2, %v2596_v10, -inf  ;;  %v2608_v27 = vmul.f32 0.35355338, %v1946_v7  ;;  %v2632_v49 = vmul.f32 0.35355338, %v353_v5 }
 0x286   :  { %v812_v15 = vsel %vm763_vm2, %v2612_v31, -inf  ;;  %v2624_v44 = vmul.f32 0.35355338, %v536_v9  ;;  %v785_v45 = vsel %vm763_vm2, %v2616_v32, -inf }
 0x287   :  { %768 = vmax.xlane.f32.xlu1 %v767_v11  ;;  %v821_v41 = vsel %vm763_vm2, %v2608_v27, -inf  ;;  %v779_v61 = vsel %vm763_vm2, %v2632_v49, -inf }
 0x288   :  { %v1939_v13 = vpop.f32.mrb[12].mxu1  ;;  %v815_v39 = vsel %vm763_vm2, %v2624_v44, -inf }
 0x289   :  { %792 = vmax.xlane.f32.xlu0 %v791_v14  ;;  %v472_v18 = vpop.f32.mrb[13].mxu1  ;;  %v2628_v47 = vmul.f32 0.35355338, %v1939_v13 }
 0x28a   :  { %v1957_v19 = vpop.f32.mrb[12].mxu0  ;;  %v1940_v22 = vpop.f32.mrb[14].mxu1  ;;  %v2644_v62 = vmul.f32 0.35355338, %v472_v18 }
 0x28b   :  { %v655_v24 = vpop.f32.mrb[13].mxu0  ;;  %v475_v26 = vpop.f32.mrb[15].mxu1  ;;  %819 = vmax.xlane.f32.xlu1 %v818_v20  ;;  %v2620_v43 = vmul.f32 0.35355338, %v1957_v19  ;;  %v806_v55 = vsel %vm763_vm2, %v2628_v47, -inf }
 0x28c   :  { %v1958_v28 = vpop.f32.mrb[14].mxu0  ;;  %v2636_v54 = vmul.f32 0.35355338, %v655_v24  ;;  %v2648_v0 = vmul.f32 0.35355338, %v1940_v22  ;;  %v800_v4 = vsel %vm763_vm2, %v2644_v62, -inf }
 0x28d   :  { %v658_v30 = vpop.f32.mrb[15].mxu0  ;;  %777 = vmax.xlane.f32.xlu0 %v776_v29  ;;  %v842_v38 = vsel %vm763_vm2, %v2620_v43, -inf  ;;  %v2640_v59 = vmul.f32 0.35355338, %v1958_v28  ;;  %v2664_v11 = vmul.f32 0.35355338, %v475_v26 }
 0x28e   :  { %v836_v63 = vsel %vm763_vm2, %v2636_v54, -inf  ;;  %v2656_v5 = vmul.f32 0.35355338, %v658_v30  ;;  %v809_v7 = vsel %vm763_vm2, %v2648_v0, -inf }
 0x28f   :  { %783 = vmax.xlane.f32.xlu1 %v782_v17  ;;  %v845_v1 = vsel %vm763_vm2, %v2640_v59, -inf  ;;  %v803_v22 = vsel %vm763_vm2, %v2664_v11, -inf }
 0x290   :  { %v1951_v33 = vpop.f32.mrb[16].mxu1  ;;  %v839_v13 = vsel %vm763_vm2, %v2656_v5, -inf }
 0x291   :  { %822 = vmax.xlane.f32.xlu0 %v821_v41  ;;  %v594_v25 = vpop.f32.mrb[17].mxu1  ;;  %v2652_v3 = vmul.f32 0.35355338, %v1951_v33 }
 0x292   :  { %v1952_v42 = vpop.f32.mrb[18].mxu1  ;;  %v2660_v8 = vmul.f32 0.35355338, %v594_v25 }
 0x293   :  { %v597_v16 = vpop.f32.mrb[19].mxu1  ;;  %813 = vmax.xlane.f32.xlu1 %v812_v15  ;;  %v830_v9 = vsel %vm763_vm2, %v2652_v3, -inf  ;;  %v2672_v19 = vmul.f32 0.35355338, %v1952_v42 }
 0x294   :  { %v824_v18 = vsel %vm763_vm2, %v2660_v8, -inf  ;;  %v2680_v26 = vmul.f32 0.35355338, %v597_v16 }
 0x295   :  { %786 = vmax.xlane.f32.xlu0 %v785_v45  ;;  %v833_v28 = vsel %vm763_vm2, %v2672_v19, -inf }
 0x296   :  { %v827_v17 = vsel %vm763_vm2, %v2680_v26, -inf }
 0x297   :  { %843 = vmax.xlane.f32.xlu1 %v842_v38 }
 0x298   :  { %v1963_v21 = vpop.f32.mrb[20].mxu1 }
 0x299   :  { %816 = vmax.xlane.f32.xlu0 %v815_v39  ;;  %v716_v51 = vpop.f32.mrb[21].mxu1  ;;  %v2668_v14 = vmul.f32 0.35355338, %v1963_v21 }
 0x29a   :  { %v1964_v52 = vpop.f32.mrb[22].mxu1  ;;  %v2676_v24 = vmul.f32 0.35355338, %v716_v51 }
 0x29b   :  { %v719_v57 = vpop.f32.mrb[23].mxu1  ;;  %807 = vmax.xlane.f32.xlu1 %v806_v55  ;;  %v854_v20 = vsel %vm763_vm2, %v2668_v14, -inf  ;;  %v2686_v30 = vmul.f32 0.35355338, %v1964_v52 }
 0x29c   :  { %v848_v29 = vsel %vm763_vm2, %v2676_v24, -inf  ;;  %v2690_v33 = vmul.f32 0.35355338, %v719_v57 }
 0x29d   :  { %780 = vmax.xlane.f32.xlu0 %v779_v61  ;;  %v857_v41 = vsel %vm763_vm2, %v2686_v30, -inf }
 0x29e   :  { %v851_v25 = vsel %vm763_vm2, %v2690_v33, -inf }
 0x29f   :  { %837 = vmax.xlane.f32.xlu1 %v836_v63 }
 0x2a1   :  { %846 = vmax.xlane.f32.xlu0 %v845_v1 }
 0x2a3   :  { %801 = vmax.xlane.f32.xlu1 %v800_v4 }
 0x2a5   :  { %810 = vmax.xlane.f32.xlu0 %v809_v7 }
 0x2a7   :  { %831 = vmax.xlane.f32.xlu1 %v830_v9 }
 0x2a9   :  { %840 = vmax.xlane.f32.xlu0 %v839_v13 }
 0x2ab   :  { %825 = vmax.xlane.f32.xlu1 %v824_v18 }
 0x2ad   :  { %804 = vmax.xlane.f32.xlu0 %v803_v22 }
 0x2af   :  { %855 = vmax.xlane.f32.xlu1 %v854_v20 }
 0x2b1   :  { %834 = vmax.xlane.f32.xlu0 %v833_v28 }
 0x2b3   :  { %849 = vmax.xlane.f32.xlu1 %v848_v29 }
 0x2b5   :  { %828 = vmax.xlane.f32.xlu0 %v827_v17 }
 0x2b9   :  { %858 = vmax.xlane.f32.xlu0 %v857_v41 }
 0x2bd   :  { %852 = vmax.xlane.f32.xlu0 %v851_v25 }
 0x2c4   :  { %1433 = vrot.lane.b32.xlu1 %v2448_v34, %s2310_s28 }
 0x2d3   :  { %1373 = vrot.lane.b32.xlu0 %v2452_v35, %s2310_s28 }
 0x308   :  { %v796_v42 = vpop.xlane.xlu1 %795 }
 0x309   :  { %v870_v15 = vsub.f32 %v2568_v48, %v796_v42 }
 0x30a   :  { %v766_v16 = vpop.xlane.xlu0 %765 }
 0x30b   :  { %v912_v45 = vmul.f32 1.442695, %v870_v15  ;;  %v860_v52 = vsub.f32 %v2570_v50, %v766_v16 }
 0x30c   :  { %v772_v38 = vpop.xlane.xlu1 %771 }
 0x30d   :  { %2059 = vpow2.f32 %v912_v45  ;;  %v862_v21 = vsub.f32 %v2572_v53, %v772_v38  ;;  %v892_v63 = vmul.f32 1.442695, %v860_v52 }
 0x30e   :  { %v799_v39 = vpop.xlane.xlu0 %798 }
 0x30f   :  { %v871_v51 = vsub.f32 %v2576_v56, %v799_v39  ;;  %v896_v55 = vmul.f32 1.442695, %v862_v21 }
 0x310   :  { %v790_v34 = vpop.xlane.xlu1 %789 }
 0x311   :  { %v914_v57 = vmul.f32 1.442695, %v871_v51  ;;  %2061 = vpow2.f32 %v896_v55  ;;  %v868_v35 = vsub.f32 %v2580_v58, %v790_v34 }
 0x312   :  { %v775_v61 = vpop.xlane.xlu0 %774 }
 0x313   :  { %2063 = vpow2.f32 %v914_v57  ;;  %v863_v48 = vsub.f32 %v2584_v60, %v775_v61  ;;  %v908_v1 = vmul.f32 1.442695, %v868_v35 }
 0x314   :  { %v769_v7 = vpop.xlane.xlu1 %768 }
 0x315   :  { %v898_v4 = vmul.f32 1.442695, %v863_v48  ;;  %2065 = vpow2.f32 %v908_v1  ;;  %v861_v53 = vsub.f32 %v2588_v2, %v769_v7 }
 0x316   :  { %v793_v56 = vpop.xlane.xlu0 %792 }
 0x317   :  { %2067 = vpow2.f32 %v898_v4  ;;  %v869_v50 = vsub.f32 %v2592_v6, %v793_v56  ;;  %v2708_v9 = vpop.eup %2059  ;;  %v894_v13 = vmul.f32 1.442695, %v861_v53 }
 0x318   :  { %2069 = vpow2.f32 %v892_v63  ;;  %v820_v18 = vpop.xlane.xlu1 %819  ;;  %v986_v60 = vsel %vm763_vm2, %v2708_v9, 0.0 }
 0x319   :  { %v910_v58 = vmul.f32 1.442695, %v869_v50  ;;  %v878_v22 = vsub.f32 %v2596_v10, %v820_v18  ;;  %987 = vadd.xlane.f32.xlu1 %v986_v60 }
 0x31a   :  { %v778_v20 = vpop.xlane.xlu0 %777 }
 0x31b   :  { %2071 = vpow2.f32 %v910_v58  ;;  %v2713_v28 = vpop.eup %2061  ;;  %v928_v2 = vmul.f32 1.442695, %v878_v22  ;;  %v864_v16 = vsub.f32 %v2600_v12, %v778_v20 }
 0x31c   :  { %2073 = vpow2.f32 %v894_v13  ;;  %v784_v6 = vpop.xlane.xlu1 %783  ;;  %v962_v17 = vsel %vm763_vm2, %v2713_v28, 0.0 }
 0x31d   :  { %v2715_v29 = vpop.eup %2063  ;;  %2075 = vpow2.f32 %v928_v2  ;;  %v866_v41 = vsub.f32 %v2604_v23, %v784_v6  ;;  %963 = vadd.xlane.f32.xlu1 %v962_v17  ;;  %v900_v57 = vmul.f32 1.442695, %v864_v16 }
 0x31e   :  { %v823_v25 = vpop.xlane.xlu0 %822  ;;  %v989_v10 = vsel %vm763_vm2, %v2715_v29, 0.0 }
 0x31f   :  { %v879_v42 = vsub.f32 %v2608_v27, %v823_v25  ;;  %990 = vadd.xlane.f32.xlu0 %v989_v10  ;;  %v2723_v15 = vpop.eup %2065  ;;  %v904_v45 = vmul.f32 1.442695, %v866_v41 }
 0x320   :  { %v814_v39 = vpop.xlane.xlu1 %813  ;;  %v980_v23 = vsel %vm763_vm2, %v2723_v15, 0.0 }
 0x321   :  { %v2726_v38 = vpop.eup %2067  ;;  %v930_v21 = vmul.f32 1.442695, %v879_v42  ;;  %2077 = vpow2.f32 %v904_v45  ;;  %v876_v52 = vsub.f32 %v2612_v31, %v814_v39  ;;  %981 = vadd.xlane.f32.xlu1 %v980_v23 }
 0x322   :  { %v2730_v51 = vpop.eup %2069  ;;  %v787_v27 = vpop.xlane.xlu0 %786  ;;  %v965_v55 = vsel %vm763_vm2, %v2726_v38, 0.0 }
 0x323   :  { %2079 = vpow2.f32 %v930_v21  ;;  %v867_v12 = vsub.f32 %v2616_v32, %v787_v27  ;;  %966 = vadd.xlane.f32.xlu0 %v965_v55  ;;  %v924_v34 = vmul.f32 1.442695, %v876_v52  ;;  %v956_v63 = vsel %vm763_vm2, %v2730_v51, 0.0 }
 0x324   :  { %v844_v48 = vpop.xlane.xlu1 %843 }
 0x325   :  { %v2736_v35 = vpop.eup %2071  ;;  %v906_v61 = vmul.f32 1.442695, %v867_v12  ;;  %2081 = vpow2.f32 %v924_v34  ;;  %v886_v31 = vsub.f32 %v2620_v43, %v844_v48  ;;  %957 = vadd.xlane.f32.xlu1 %v956_v63 }
 0x326   :  { %v817_v1 = vpop.xlane.xlu0 %816  ;;  %v983_v4 = vsel %vm763_vm2, %v2736_v35, 0.0  ;;  %v2743_v7 = vpop.eup %2073 }
 0x327   :  { %2083 = vpow2.f32 %v906_v61  ;;  %v877_v32 = vsub.f32 %v2624_v44, %v817_v1  ;;  %984 = vadd.xlane.f32.xlu0 %v983_v4  ;;  %v2746_v53 = vpop.eup %2075  ;;  %v944_v56 = vmul.f32 1.442695, %v886_v31  ;;  %v959_v60 = vsel %vm763_vm2, %v2743_v7, 0.0 }
 0x328   :  { %2085 = vpow2.f32 %v900_v57  ;;  %v808_v13 = vpop.xlane.xlu1 %807  ;;  %v1010_v43 = vsel %vm763_vm2, %v2746_v53, 0.0 }
 0x329   :  { %v926_v50 = vmul.f32 1.442695, %v877_v32  ;;  %v874_v58 = vsub.f32 %v2628_v47, %v808_v13  ;;  %1011 = vadd.xlane.f32.xlu1 %v1010_v43 }
 0x32a   :  { %v781_v18 = vpop.xlane.xlu0 %780 }
 0x32b   :  { %2087 = vpow2.f32 %v926_v50  ;;  %v865_v44 = vsub.f32 %v2632_v49, %v781_v18  ;;  %960 = vadd.xlane.f32.xlu0 %v959_v60  ;;  %v2754_v22 = vpop.eup %2077  ;;  %v920_v20 = vmul.f32 1.442695, %v874_v58 }
 0x32c   :  { %2089 = vpow2.f32 %v944_v56  ;;  %v838_v17 = vpop.xlane.xlu1 %837  ;;  %v974_v47 = vsel %vm763_vm2, %v2754_v22, 0.0 }
 0x32d   :  { %v2756_v2 = vpop.eup %2079  ;;  %v902_v6 = vmul.f32 1.442695, %v865_v44  ;;  %v884_v41 = vsub.f32 %v2636_v54, %v838_v17  ;;  %975 = vadd.xlane.f32.xlu1 %v974_v47 }
 0x32e   :  { %v847_v25 = vpop.xlane.xlu0 %846  ;;  %v1013_v10 = vsel %vm763_vm2, %v2756_v2, 0.0 }
 0x32f   :  { %2091 = vpow2.f32 %v902_v6  ;;  %v887_v49 = vsub.f32 %v2640_v59, %v847_v25  ;;  %1014 = vadd.xlane.f32.xlu0 %v1013_v10  ;;  %v2764_v42 = vpop.eup %2081  ;;  %v940_v16 = vmul.f32 1.442695, %v884_v41 }
 0x330   :  { %2093 = vpow2.f32 %v920_v20  ;;  %v802_v39 = vpop.xlane.xlu1 %801  ;;  %v1004_v54 = vsel %vm763_vm2, %v2764_v42, 0.0 }
 0x331   :  { %v2766_v45 = vpop.eup %2083  ;;  %v946_v21 = vmul.f32 1.442695, %v887_v49  ;;  %v872_v52 = vsub.f32 %v2644_v62, %v802_v39  ;;  %1005 = vadd.xlane.f32.xlu1 %v1004_v54 }
 0x332   :  { %v2770_v23 = vpop.eup %2085  ;;  %v811_v27 = vpop.xlane.xlu0 %810  ;;  %v977_v59 = vsel %vm763_vm2, %v2766_v45, 0.0 }
 0x333   :  { %2095 = vpow2.f32 %v946_v21  ;;  %v875_v55 = vsub.f32 %v2648_v0, %v811_v27  ;;  %978 = vadd.xlane.f32.xlu0 %v977_v59  ;;  %v916_v12 = vmul.f32 1.442695, %v872_v52  ;;  %v968_v48 = vsel %vm763_vm2, %v2770_v23, 0.0 }
 0x334   :  { %2097 = vpow2.f32 %v940_v16  ;;  %v832_v61 = vpop.xlane.xlu1 %831 }
 0x335   :  { %v2776_v57 = vpop.eup %2087  ;;  %v922_v34 = vmul.f32 1.442695, %v875_v55  ;;  %v882_v62 = vsub.f32 %v2652_v3, %v832_v61  ;;  %969 = vadd.xlane.f32.xlu1 %v968_v48 }
 0x336   :  { %v2780_v63 = vpop.eup %2089  ;;  %v841_v31 = vpop.xlane.xlu0 %840  ;;  %v1007_v1 = vsel %vm763_vm2, %v2776_v57, 0.0 }
 0x337   :  { %2099 = vpow2.f32 %v922_v34  ;;  %v885_v0 = vsub.f32 %v2656_v5, %v841_v31  ;;  %1008 = vadd.xlane.f32.xlu0 %v1007_v1  ;;  %v936_v4 = vmul.f32 1.442695, %v882_v62  ;;  %v1034_v13 = vsel %vm763_vm2, %v2780_v63, 0.0 }
 0x338   :  { %2101 = vpow2.f32 %v916_v12  ;;  %v826_v50 = vpop.xlane.xlu1 %825 }
 0x339   :  { %v2786_v32 = vpop.eup %2091  ;;  %v942_v56 = vmul.f32 1.442695, %v885_v0  ;;  %v880_v3 = vsub.f32 %v2660_v8, %v826_v50  ;;  %1035 = vadd.xlane.f32.xlu1 %v1034_v13 }
 0x33a   :  { %v2790_v43 = vpop.eup %2093  ;;  %v805_v58 = vpop.xlane.xlu0 %804  ;;  %v971_v18 = vsel %vm763_vm2, %v2786_v32, 0.0 }
 0x33b   :  { %2103 = vpow2.f32 %v942_v56  ;;  %v873_v5 = vsub.f32 %v2664_v11, %v805_v58  ;;  %972 = vadd.xlane.f32.xlu0 %v971_v18  ;;  %v932_v60 = vmul.f32 1.442695, %v880_v3  ;;  %v998_v17 = vsel %vm763_vm2, %v2790_v43, 0.0 }
 0x33c   :  { %2105 = vpow2.f32 %v936_v4  ;;  %v856_v6 = vpop.xlane.xlu1 %855 }
 0x33d   :  { %v2796_v44 = vpop.eup %2095  ;;  %v918_v20 = vmul.f32 1.442695, %v873_v5  ;;  %v890_v8 = vsub.f32 %v2668_v14, %v856_v6  ;;  %999 = vadd.xlane.f32.xlu1 %v998_v17 }
 0x33e   :  { %v2800_v47 = vpop.eup %2097  ;;  %v835_v41 = vpop.xlane.xlu0 %834  ;;  %v1037_v25 = vsel %vm763_vm2, %v2796_v44, 0.0 }
 0x33f   :  { %2107 = vpow2.f32 %v918_v20  ;;  %v883_v11 = vsub.f32 %v2672_v19, %v835_v41  ;;  %1038 = vadd.xlane.f32.xlu0 %v1037_v25  ;;  %v952_v10 = vmul.f32 1.442695, %v890_v8  ;;  %v1028_v39 = vsel %vm763_vm2, %v2800_v47, 0.0 }
 0x340   :  { %2109 = vpow2.f32 %v932_v60  ;;  %v850_v21 = vpop.xlane.xlu1 %849 }
 0x341   :  { %v2806_v49 = vpop.eup %2099  ;;  %v938_v16 = vmul.f32 1.442695, %v883_v11  ;;  %v888_v14 = vsub.f32 %v2676_v24, %v850_v21  ;;  %1029 = vadd.xlane.f32.xlu1 %v1028_v39 }
 0x342   :  { %v2810_v54 = vpop.eup %2101  ;;  %v829_v52 = vpop.xlane.xlu0 %828  ;;  %v1001_v27 = vsel %vm763_vm2, %v2806_v49, 0.0 }
 0x343   :  { %2111 = vpow2.f32 %v938_v16  ;;  %v881_v19 = vsub.f32 %v2680_v26, %v829_v52  ;;  %1002 = vadd.xlane.f32.xlu0 %v1001_v27  ;;  %v948_v59 = vmul.f32 1.442695, %v888_v14  ;;  %v992_v34 = vsel %vm763_vm2, %v2810_v54, 0.0 }
 0x344   :  { %2113 = vpow2.f32 %v952_v10  ;;  %v2864_v11 = vpop.permute.xlu1 %1433 }
 0x345   :  { %v2816_v55 = vpop.eup %2103  ;;  %v934_v12 = vmul.f32 1.442695, %v881_v19  ;;  %993 = vadd.xlane.f32.xlu1 %v992_v34 }
 0x346   :  { %v2820_v61 = vpop.eup %2105  ;;  %v859_v24 = vpop.xlane.xlu0 %858  ;;  %v1031_v48 = vsel %vm763_vm2, %v2816_v55, 0.0 }
 0x347   :  { %2115 = vpow2.f32 %v934_v12  ;;  %v891_v62 = vsub.f32 %v2686_v30, %v859_v24  ;;  %1032 = vadd.xlane.f32.xlu0 %v1031_v48  ;;  %v1022_v1 = vsel %vm763_vm2, %v2820_v61, 0.0 }
 0x348   :  { %2117 = vpow2.f32 %v948_v59 }
 0x349   :  { %v2825_v26 = vpop.eup %2107  ;;  %v954_v31 = vmul.f32 1.442695, %v891_v62  ;;  %1023 = vadd.xlane.f32.xlu1 %v1022_v1 }
 0x34a   :  { %v2829_v0 = vpop.eup %2109  ;;  %v853_v4 = vpop.xlane.xlu0 %852  ;;  %v995_v56 = vsel %vm763_vm2, %v2825_v26, 0.0 }
 0x34b   :  { %2119 = vpow2.f32 %v954_v31  ;;  %v889_v50 = vsub.f32 %v2690_v33, %v853_v4  ;;  %996 = vadd.xlane.f32.xlu0 %v995_v56  ;;  %v1016_v3 = vsel %vm763_vm2, %v2829_v0, 0.0 }
 0x34d   :  { %v2834_v30 = vpop.eup %2111  ;;  %v950_v13 = vmul.f32 1.442695, %v889_v50  ;;  %1017 = vadd.xlane.f32.xlu1 %v1016_v3 }
 0x34e   :  { %v2838_v58 = vpop.eup %2113  ;;  %v1025_v18 = vsel %vm763_vm2, %v2834_v30, 0.0  ;;  %v2866_v16 = vpop.permute.xlu0 %1373 }
 0x34f   :  { %2121 = vpow2.f32 %v950_v13  ;;  %1026 = vadd.xlane.f32.xlu0 %v1025_v18  ;;  %v1046_v33 = vsel %vm763_vm2, %v2838_v58, 0.0 }
 0x351   :  { %v2842_v5 = vpop.eup %2115  ;;  %1047 = vadd.xlane.f32.xlu1 %v1046_v33 }
 0x352   :  { %v2846_v60 = vpop.eup %2117  ;;  %v1019_v20 = vsel %vm763_vm2, %v2842_v5, 0.0 }
 0x353   :  { %1020 = vadd.xlane.f32.xlu0 %v1019_v20  ;;  %v1040_v17 = vsel %vm763_vm2, %v2846_v60, 0.0 }
 0x355   :  { %v2850_v6 = vpop.eup %2119  ;;  %1041 = vadd.xlane.f32.xlu1 %v1040_v17 }
 0x356   :  { %v1049_v8 = vsel %vm763_vm2, %v2850_v6, 0.0 }
 0x357   :  { %1050 = vadd.xlane.f32.xlu0 %v1049_v8 }
 0x359   :  { %v2856_v41 = vpop.eup %2121 }
 0x35a   :  { %v1043_v25 = vsel %vm763_vm2, %v2856_v41, 0.0 }
 0x35b   :  { %1044 = vadd.xlane.f32.xlu0 %v1043_v25 }
 0x366   :  { %1553 = vrot.lane.b32.xlu1 %v2457_v36, %s2310_s28 }
 0x371   :  { %1493 = vrot.lane.b32.xlu0 %v2462_v37, %s2310_s28 }
 0x3a6   :  { %v988_v10 = vpop.xlane.xlu1 %987 }
 0x3aa   :  { %v964_v21 = vpop.xlane.xlu1 %963 }
 0x3ab   :  { %2123 = vrcp.f32 %v964_v21 }
 0x3ac   :  { %v991_v39 = vpop.xlane.xlu0 %990 }
 0x3ae   :  { %v982_v14 = vpop.xlane.xlu1 %981 }
 0x3b0   :  { %v967_v52 = vpop.xlane.xlu0 %966 }
 0x3b1   :  { %2125 = vrcp.f32 %v967_v52 }
 0x3b2   :  { %v958_v27 = vpop.xlane.xlu1 %957 }
 0x3b3   :  { %2127 = vrcp.f32 %v958_v27 }
 0x3b4   :  { %v985_v19 = vpop.xlane.xlu0 %984 }
 0x3b5   :  { %2129 = vrcp.f32 %v985_v19  ;;  %v2124_v34 = vpop.eup %2123 }
 0x3b6   :  { %v1012_v59 = vpop.xlane.xlu1 %1011  ;;  %2131 = vrcp.f32 %v982_v14  ;;  %v1086_v17 = vmul.f32 %v2124_v34, %v2713_v28 }
 0x3b8   :  { %v961_v36 = vpop.xlane.xlu0 %960 }
 0x3b9   :  { %2133 = vrcp.f32 %v961_v36 }
 0x3ba   :  { %v976_v37 = vpop.xlane.xlu1 %975  ;;  %2135 = vrcp.f32 %v991_v39 }
 0x3bb   :  { %v2126_v24 = vpop.eup %2125  ;;  %2137 = vrcp.f32 %v988_v10 }
 0x3bc   :  { %v1015_v12 = vpop.xlane.xlu0 %1014  ;;  %2139 = vrcp.f32 %v1012_v59  ;;  %v1087_v50 = vmul.f32 %v2126_v24, %v2726_v38 }
 0x3bd   :  { %v2128_v62 = vpop.eup %2127 }
 0x3be   :  { %v1006_v48 = vpop.xlane.xlu1 %1005  ;;  %v1084_v18 = vmul.f32 %v2128_v62, %v2730_v51  ;;  %v1117_v38 = vpack.c.bf16 %v1087_v50, %v1086_v17  ;;  %v1382_v62 = vsel %vm1140_vm1, %v2866_v16, 0 }
 0x3bf   :  { %v2130_v1 = vpop.eup %2129  ;;  %2141 = vrcp.f32 %v1006_v48 }
 0x3c0   :  { %v979_v31 = vpop.xlane.xlu0 %978  ;;  %v2132_v4 = vpop.eup %2131  ;;  %2143 = vrcp.f32 %v1015_v12  ;;  %v1093_v20 = vmul.f32 %v2130_v1, %v2736_v35 }
 0x3c1   :  { %v1092_v25 = vmul.f32 %v2132_v4, %v2723_v15 }
 0x3c2   :  { %v970_v13 = vpop.xlane.xlu1 %969 }
 0x3c3   :  { %v2134_v56 = vpop.eup %2133  ;;  %v1120_v51 = vpack.c.bf16 %v1093_v20, %v1092_v25 }
 0x3c4   :  { %v1009_v3 = vpop.xlane.xlu0 %1008  ;;  %v1085_v33 = vmul.f32 %v2134_v56, %v2743_v7  ;;  %v2136_v21 = vpop.eup %2135  ;;  %v1262_v7 = vsel %vm1140_vm1, %v2550_v40, 0 }
 0x3c5   :  { %2145 = vrcp.f32 %v1009_v3  ;;  %v2138_v28 = vpop.eup %2137  ;;  %v1095_v15 = vmul.f32 %v2136_v21, %v2715_v29 }
 0x3c6   :  { %2147 = vrcp.f32 %v979_v31  ;;  %v1116_v8 = vpack.c.bf16 %v1085_v33, %v1084_v18  ;;  %v1036_v10 = vpop.xlane.xlu1 %1035  ;;  %v2140_v14 = vpop.eup %2139  ;;  %v1094_v19 = vmul.f32 %v2138_v28, %v2708_v9 }
 0x3c7   :  { %2149 = vrcp.f32 %v970_v13 }
 0x3c8   :  { %2151 = vrcp.f32 %v976_v37  ;;  %1967 = vmatprep.mubr.msk.bf16.mxu0 %vm763_vm2, %v1116_v8  ;;  %v973_v39 = vpop.xlane.xlu0 %972  ;;  %v1121_v37 = vpack.c.bf16 %v1095_v15, %v1094_v19 }
 0x3c9   :  { %2153 = vrcp.f32 %v973_v39  ;;  %1968 = vmatmul.mubr.msk.bf16.vlgmr.msra.gmra.mrb[16].mxu0 %vm763_vm2, %v1117_v38  ;;  %v2142_v27 = vpop.eup %2141 }
 0x3ca   :  { %1978 = vmatpush3.bf16.msra.mxu0 %v1262_v7  ;;  %1979 = vmatprep.mubr.msk.bf16.mxu0 %vm763_vm2, %v1120_v51  ;;  %v1000_v35 = vpop.xlane.xlu1 %999  ;;  %v2144_v59 = vpop.eup %2143  ;;  %v1100_v24 = vmul.f32 %v2142_v27, %v2764_v42 }
 0x3cb   :  { %2041 = vmatprep.subr.msk.bf16.mxu0 %vm1140_vm1, %v2866_v16  ;;  %v1103_v4 = vmul.f32 %v2144_v59, %v2756_v2  ;;  %v1102_v16 = vmul.f32 %v2140_v14, %v2746_v53 }
 0x3cc   :  { %v1039_v52 = vpop.xlane.xlu0 %1038 }
 0x3ce   :  { %v1030_v36 = vpop.xlane.xlu1 %1029 }
 0x3cf   :  { %v2146_v40 = vpop.eup %2145  ;;  %2155 = vrcp.f32 %v1030_v36 }
 0x3d0   :  { %v2148_v12 = vpop.eup %2147  ;;  %v1003_v34 = vpop.xlane.xlu0 %1002  ;;  %v1101_v48 = vmul.f32 %v2146_v40, %v2776_v57 }
 0x3d1   :  { %v2150_v29 = vpop.eup %2149  ;;  %1980 = vmatmul.mubr.msk.bf16.vlgmr.msra.gmra.mrb[20].mxu0 %vm763_vm2, %v1121_v37  ;;  %v1091_v56 = vmul.f32 %v2148_v12, %v2766_v45  ;;  %v1125_v45 = vpack.c.bf16 %v1103_v4, %v1102_v16  ;;  %v1442_v37 = vsel %vm1140_vm1, %v2864_v11, 0  ;;  %v2057_v16 = vld [vmem:[#allocation7] sm:$0xff]  }
 0x3d2   :  { %v2152_v31 = vpop.eup %2151  ;;  %1990 = vmatpush3.bf16.msra.mxu0 %v1382_v62  ;;  %v1124_v1 = vpack.c.bf16 %v1101_v48, %v1100_v24  ;;  %v994_v50 = vpop.xlane.xlu1 %993  ;;  %v1088_v57 = vmul.f32 %v2150_v29, %v2770_v23  ;;  %v1322_v23 = vsel %vm1140_vm1, %v2564_v46, 0 }
 0x3d3   :  { %v2154_v9 = vpop.eup %2153  ;;  %v1090_v3 = vmul.f32 %v2152_v31, %v2754_v22 }
 0x3d4   :  { %1991 = vmatprep.mubr.msk.bf16.mxu0 %vm763_vm2, %v1124_v1  ;;  %v1033_v42 = vpop.xlane.xlu0 %1032  ;;  %v1089_v13 = vmul.f32 %v2154_v9, %v2786_v32 }
 0x3d5   :  { %2157 = vrcp.f32 %v1033_v42  ;;  %v1119_v33 = vpack.c.bf16 %v1091_v56, %v1090_v3  ;;  %v2058_v3 = vld [vmem:[#allocation7 + $0x8] sm:$0xff]  }
 0x3d6   :  { %2159 = vrcp.f32 %v1003_v34  ;;  %v1118_v18 = vpack.c.bf16 %v1089_v13, %v1088_v57  ;;  %v1024_v2 = vpop.xlane.xlu1 %1023 }
 0x3d7   :  { %2161 = vrcp.f32 %v994_v50 }
 0x3d8   :  { %2163 = vrcp.f32 %v1000_v35  ;;  %1973 = vmatprep.mubr.msk.bf16.mxu1 %vm763_vm2, %v1118_v18  ;;  %v997_v20 = vpop.xlane.xlu0 %996 }
 0x3d9   :  { %2165 = vrcp.f32 %v997_v20  ;;  %1974 = vmatmul.mubr.msk.bf16.vlgmr.msra.gmra.mrb[24].mxu1 %vm763_vm2, %v1119_v33  ;;  %1992 = vmatmul.mubr.msk.bf16.vlgmr.msra.gmra.mrb[24].mxu0 %vm763_vm2, %v1125_v45  ;;  %v2156_v32 = vpop.eup %2155  ;;  %v2932_v33 = vld [vmem:[#allocation8] sm:$0xff]  ;;  %v2938_v20 = vld [vmem:[#allocation8 + $0x10] sm:$0xff] }
 0x3da   :  { %1984 = vmatpush3.bf16.msra.mxu1 %v1322_v23  ;;  %v1018_v53 = vpop.xlane.xlu1 %1017  ;;  %2167 = vrcp.f32 %v1036_v10  ;;  %v1108_v38 = vmul.f32 %v2156_v32, %v2800_v47 }
 0x3db   :  { %2042 = vmatprep.subr.msk.bf16.mxu1 %vm1140_vm1, %v2864_v11  ;;  %2169 = vrcp.f32 %v1039_v52 }
 0x3dc   :  { %v1027_v22 = vpop.xlane.xlu0 %1026 }
 0x3dd   :  { %2171 = vrcp.f32 %v1027_v22  ;;  %v2941_v22 = vld [vmem:[#allocation8 + $0x18] sm:$0xff] }
 0x3de   :  { %2173 = vrcp.f32 %v1018_v53  ;;  %v1048_v8 = vpop.xlane.xlu1 %1047 }
 0x3df   :  { %v2158_v17 = vpop.eup %2157  ;;  %2175 = vrcp.f32 %v1024_v2 }
 0x3e0   :  { %v2160_v25 = vpop.eup %2159  ;;  %v1021_v46 = vpop.xlane.xlu0 %1020  ;;  %v1109_v21 = vmul.f32 %v2158_v17, %v2816_v55 }
 0x3e1   :  { %v2162_v39 = vpop.eup %2161  ;;  %2177 = vrcp.f32 %v1021_v46  ;;  %v1099_v10 = vmul.f32 %v2160_v25, %v2806_v49 }
 0x3e2   :  { %v2164_v51 = vpop.eup %2163  ;;  %v1128_v7 = vpack.c.bf16 %v1109_v21, %v1108_v38  ;;  %v1042_v15 = vpop.xlane.xlu1 %1041  ;;  %v1096_v14 = vmul.f32 %v2162_v39, %v2810_v54 }
 0x3e3   :  { %v2166_v28 = vpop.eup %2165  ;;  %v1098_v27 = vmul.f32 %v2164_v51, %v2790_v43 }
 0x3e4   :  { %2003 = vmatprep.mubr.msk.bf16.mxu0 %vm763_vm2, %v1128_v7  ;;  %v1051_v35 = vpop.xlane.xlu0 %1050  ;;  %v1097_v52 = vmul.f32 %v2166_v28, %v2825_v26  ;;  %v2168_v47 = vpop.eup %2167 }
 0x3e5   :  { %2179 = vrcp.f32 %v1051_v35  ;;  %v2170_v19 = vpop.eup %2169  ;;  %v1123_v59 = vpack.c.bf16 %v1099_v10, %v1098_v27  ;;  %v1110_v11 = vmul.f32 %v2168_v47, %v2780_v63 }
 0x3e6   :  { %v1122_v55 = vpack.c.bf16 %v1097_v52, %v1096_v14  ;;  %2181 = vrcp.f32 %v1042_v15  ;;  %v1554_v43 = vpop.permute.xlu1 %1553  ;;  %v1111_v12 = vmul.f32 %v2170_v19, %v2796_v44 }
 0x3e7   :  { %v2172_v40 = vpop.eup %2171  ;;  %2183 = vrcp.f32 %v1048_v8 }
 0x3e8   :  { %1985 = vmatprep.mubr.msk.bf16.mxu1 %vm763_vm2, %v1122_v55  ;;  %v1045_v49 = vpop.xlane.xlu0 %1044  ;;  %v2174_v36 = vpop.eup %2173  ;;  %v1107_v34 = vmul.f32 %v2172_v40, %v2834_v30  ;;  %v1129_v9 = vpack.c.bf16 %v1111_v12, %v1110_v11 }
 0x3e9   :  { %2185 = vrcp.f32 %v1045_v49  ;;  %1986 = vmatmul.mubr.msk.bf16.vlgmr.msra.gmra.mrb[28].mxu1 %vm763_vm2, %v1123_v59  ;;  %v2176_v54 = vpop.eup %2175  ;;  %v1104_v48 = vmul.f32 %v2174_v36, %v2829_v0  ;;  %v1562_v0 = vsel %vm1140_vm1, %v1554_v43, 0 }
 0x3ea   :  { %1996 = vmatpush3.bf16.msra.mxu1 %v1442_v37  ;;  %v1106_v62 = vmul.f32 %v2176_v54, %v2820_v61 }
 0x3eb   :  { %v2178_v26 = vpop.eup %2177  ;;  %2044 = vmatprep.subr.msk.bf16.mxu1 %vm1140_vm1, %v1554_v43 }
 0x3ec   :  { %v1494_v24 = vpop.permute.xlu0 %1493  ;;  %v1105_v29 = vmul.f32 %v2178_v26, %v2842_v5  ;;  %v1127_v44 = vpack.c.bf16 %v1107_v34, %v1106_v62 }
 0x3ed   :  { %v1502_v31 = vsel %vm1140_vm1, %v1494_v24, 0  ;;  %2043 = vmatprep.subr.msk.bf16.mxu0 %vm1140_vm1, %v1494_v24 }
 0x3ee   :  { %2002 = vmatpush3.bf16.msra.mxu0 %v1502_v31  ;;  %v1126_v1 = vpack.c.bf16 %v1105_v29, %v1104_v48 }
 0x3ef   :  { %v2180_v30 = vpop.eup %2179  ;;  %2013 = vmatprep.subr.bf16.mxu0 %v2057_v16 }
 0x3f0   :  { %1997 = vmatprep.mubr.msk.bf16.mxu1 %vm763_vm2, %v1126_v1  ;;  %v2182_v4 = vpop.eup %2181  ;;  %v1115_v5 = vmul.f32 %v2180_v30, %v2850_v6 }
 0x3f1   :  { %1998 = vmatmul.mubr.msk.bf16.vlgmr.msra.gmra.mrb[32].mxu1 %vm763_vm2, %v1127_v44  ;;  %2004 = vmatmul.mubr.msk.bf16.vlgmr.msra.gmra.mrb[28].mxu0 %vm763_vm2, %v1129_v9  ;;  %v2184_v63 = vpop.eup %2183  ;;  %v1112_v56 = vmul.f32 %v2182_v4, %v2846_v60 }
 0x3f2   :  { %2008 = vmatpush3.bf16.msra.mxu1 %v1562_v0  ;;  %v1114_v42 = vmul.f32 %v2184_v63, %v2838_v58  ;;  %2014 = vmatpush3.bf16.msra.mxu0 %v2057_v16 }
 0x3f3   :  { %v2186_v61 = vpop.eup %2185  ;;  %2015 = vmatprep.subr.bf16.mxu0 %v2058_v3 }
 0x3f4   :  { %v1113_v50 = vmul.f32 %v2186_v61, %v2856_v41  ;;  %v1131_v13 = vpack.c.bf16 %v1115_v5, %v1114_v42  ;;  %v2935_v41 = vld [vmem:[#allocation8 + $0x8] sm:$0xff] }
 0x3f6   :  { %v1130_v57 = vpack.c.bf16 %v1113_v50, %v1112_v56  ;;  %2016 = vmatpush3.bf16.msra.mxu0 %v2058_v3 }
 0x3f8   :  { %2009 = vmatprep.mubr.msk.bf16.mxu1 %vm763_vm2, %v1130_v57 }
 0x3f9   :  { %2010 = vmatmul.mubr.msk.bf16.vlgmr.msra.gmra.mrb[36].mxu1 %vm763_vm2, %v1131_v13 }
 0x49c   :  { %v1969_v18 = vpop.f32.mrb[16].mxu0 }
 0x49d   :  { %v1178_v6 = vpop.f32.mrb[17].mxu0  ;;  %v1615_v23 = vmul.f32 %v2938_v20, %v1969_v18 }
 0x49e   :  { %v1970_v2 = vpop.f32.mrb[18].mxu0  ;;  %v1613_v58 = vmul.f32 %v2932_v33, %v1178_v6 }
 0x49f   :  { %v1181_v60 = vpop.f32.mrb[19].mxu0  ;;  %v1616_v32 = vmul.f32 %v2941_v22, %v1970_v2 }
 0x4a0   :  { %v1614_v45 = vmul.f32 %v2935_v41, %v1181_v60 }
 0x4a2   :  { %v1645_v53 = vadd.f32 %v1614_v45, %v1613_v58 }
 0x4a4   :  { %v1653_v17 = vadd.f32 %v1645_v53, %v1615_v23  ;;  %v1981_v8 = vpop.f32.mrb[20].mxu0 }
 0x4a5   :  { %v1298_v25 = vpop.f32.mrb[21].mxu0  ;;  %v1623_v7 = vmul.f32 %v2938_v20, %v1981_v8 }
 0x4a6   :  { %v1661_v46 = vadd.f32 %v1653_v17, %v1616_v32  ;;  %v1982_v38 = vpop.f32.mrb[22].mxu0  ;;  %v1621_v39 = vmul.f32 %v2932_v33, %v1298_v25 }
 0x4a7   :  { %v1301_v21 = vpop.f32.mrb[23].mxu0  ;;  %v1624_v10 = vmul.f32 %v2941_v22, %v1982_v38 }
 0x4a8   :  { %v1622_v51 = vmul.f32 %v2935_v41, %v1301_v21 }
 0x4aa   :  { %v1647_v28 = vadd.f32 %v1622_v51, %v1621_v39 }
 0x4ac   :  { %v1655_v15 = vadd.f32 %v1647_v28, %v1623_v7  ;;  %v1975_v35 = vpop.f32.mrb[24].mxu1  ;;  %v1993_v14 = vpop.f32.mrb[24].mxu0 }
 0x4ad   :  { %v1238_v52 = vpop.f32.mrb[25].mxu1  ;;  %v1418_v27 = vpop.f32.mrb[25].mxu0  ;;  %v1619_v43 = vmul.f32 %v2938_v20, %v1975_v35  ;;  %v1631_v26 = vmul.f32 %v2938_v20, %v1993_v14 }
 0x4ae   :  { %v1663_v47 = vadd.f32 %v1655_v15, %v1624_v10  ;;  %v1976_v55 = vpop.f32.mrb[26].mxu1  ;;  %v1994_v19 = vpop.f32.mrb[26].mxu0  ;;  %v1617_v49 = vmul.f32 %v2932_v33, %v1238_v52  ;;  %v1629_v36 = vmul.f32 %v2932_v33, %v1418_v27 }
 0x4af   :  { %v1241_v59 = vpop.f32.mrb[27].mxu1  ;;  %v1421_v40 = vpop.f32.mrb[27].mxu0  ;;  %v1620_v24 = vmul.f32 %v2941_v22, %v1976_v55  ;;  %v1632_v48 = vmul.f32 %v2941_v22, %v1994_v19 }
 0x4b0   :  { %v1618_v37 = vmul.f32 %v2935_v41, %v1241_v59  ;;  %v1630_v54 = vmul.f32 %v2935_v41, %v1421_v40 }
 0x4b2   :  { %v1646_v12 = vadd.f32 %v1618_v37, %v1617_v49  ;;  %v1649_v34 = vadd.f32 %v1630_v54, %v1629_v36  ;;  %v1838_v37 = vld [vmem:[%s3005_s3] ss:$0 sm:$0xff]  ;;  %s2318_s3 = smov [#allocation10]  }
 0x4b3   :  { %s1786_s20 = sshll.u32 %s2318_s3, 4  ;;  %s1787_s20 = int_to_ptr.vmem [resolvable:$true] %s1786_s20 }
 0x4b4   :  { %v1654_v29 = vadd.f32 %v1646_v12, %v1619_v43  ;;  %v1657_v11 = vadd.f32 %v1649_v34, %v1631_v26  ;;  %s2279_s21 = scalar_lea.vmem %s1787_s20, 1024  ;;  %p2284_p5 = scmp.lt.s32.totalorder %s1787_s20, %s1787_s20 }
 0x4b5   :  { %p2280_p4 = scmp.ne.s32.totalorder %s1787_s20, %s2279_s21  ;;  %p2285_p6 = scmp.lt.s32.totalorder %s2279_s21, %s2279_s21 }
 0x4b6   :  { %v1662_v62 = vadd.f32 %v1654_v29, %v1620_v24  ;;  %v1665_v31 = vadd.f32 %v1657_v11, %v1632_v48 }
 0x4b7   :  { %p2286_p7 = por %p2285_p6, %p2284_p5 }
 0x4b8   :  { %v1669_v1 = vpack.c.bf16 %v1662_v62, %v1661_v46 }
 0x4b9   :  { %p2287_p8 = pnand %p2286_p7, %p2280_p4 }
 0x4ba   :  { %2017 = vmatprep.mubr.msk.bf16.mxu0 %vm105_vm0, %v1669_v1 }
 0x4bc   :  { %v1987_v44 = vpop.f32.mrb[28].mxu1 }
 0x4bd   :  { %v1358_v9 = vpop.f32.mrb[29].mxu1  ;;  %v1627_v61 = vmul.f32 %v2938_v20, %v1987_v44 }
 0x4be   :  { %v1988_v30 = vpop.f32.mrb[30].mxu1  ;;  %v1625_v0 = vmul.f32 %v2932_v33, %v1358_v9 }
 0x4bf   :  { %v1361_v4 = vpop.f32.mrb[31].mxu1  ;;  %v1628_v56 = vmul.f32 %v2941_v22, %v1988_v30 }
 0x4c0   :  { %v1626_v63 = vmul.f32 %v2935_v41, %v1361_v4 }
 0x4c2   :  { %v1648_v5 = vadd.f32 %v1626_v63, %v1625_v0 }
 0x4c4   :  { %v1656_v50 = vadd.f32 %v1648_v5, %v1627_v61  ;;  %v1999_v42 = vpop.f32.mrb[32].mxu1  ;;  %v2005_v57 = vpop.f32.mrb[28].mxu0 }
 0x4c5   :  { %v1478_v13 = vpop.f32.mrb[33].mxu1  ;;  %v1538_v16 = vpop.f32.mrb[29].mxu0  ;;  %v1635_v17 = vmul.f32 %v2938_v20, %v1999_v42  ;;  %v1639_v8 = vmul.f32 %v2938_v20, %v2005_v57 }
 0x4c6   :  { %v1664_v3 = vadd.f32 %v1656_v50, %v1628_v56  ;;  %v2000_v18 = vpop.f32.mrb[34].mxu1  ;;  %v2006_v6 = vpop.f32.mrb[30].mxu0  ;;  %v1633_v2 = vmul.f32 %v2932_v33, %v1478_v13  ;;  %v1637_v23 = vmul.f32 %v2932_v33, %v1538_v16 }
 0x4c7   :  { %v1481_v60 = vpop.f32.mrb[35].mxu1  ;;  %v1541_v58 = vpop.f32.mrb[31].mxu0  ;;  %v1636_v38 = vmul.f32 %v2941_v22, %v2000_v18  ;;  %v1640_v21 = vmul.f32 %v2941_v22, %v2006_v6 }
 0x4c8   :  { %v1670_v45 = vpack.c.bf16 %v1664_v3, %v1663_v47  ;;  %v1634_v53 = vmul.f32 %v2935_v41, %v1481_v60  ;;  %v1638_v32 = vmul.f32 %v2935_v41, %v1541_v58 }
 0x4ca   :  { %v1650_v25 = vadd.f32 %v1634_v53, %v1633_v2  ;;  %v1651_v46 = vadd.f32 %v1638_v32, %v1637_v23  ;;  %2018 = vmatmul.mubr.msk.bf16.vlgmr.msra.gmra.mrb[32].mxu0 %vm105_vm0, %v1670_v45 }
 0x4cc   :  { %v1658_v39 = vadd.f32 %v1650_v25, %v1635_v17  ;;  %v1659_v51 = vadd.f32 %v1651_v46, %v1639_v8  ;;  %v2011_v7 = vpop.f32.mrb[36].mxu1 }
 0x4cd   :  { %v1598_v28 = vpop.f32.mrb[37].mxu1  ;;  %v1643_v55 = vmul.f32 %v2938_v20, %v2011_v7 }
 0x4ce   :  { %v1666_v10 = vadd.f32 %v1658_v39, %v1636_v38  ;;  %v1667_v15 = vadd.f32 %v1659_v51, %v1640_v21  ;;  %v2012_v35 = vpop.f32.mrb[38].mxu1  ;;  %v1641_v52 = vmul.f32 %v2932_v33, %v1598_v28 }
 0x4cf   :  { %v1601_v14 = vpop.f32.mrb[39].mxu1  ;;  %v1644_v59 = vmul.f32 %v2941_v22, %v2012_v35 }
 0x4d0   :  { %v1642_v27 = vmul.f32 %v2935_v41, %v1601_v14  ;;  %v1671_v47 = vpack.c.bf16 %v1666_v10, %v1665_v31 }
 0x4d2   :  { %v1652_v19 = vadd.f32 %v1642_v27, %v1641_v52  ;;  %2021 = vmatprep.mubr.msk.bf16.mxu0 %vm105_vm0, %v1671_v47 }
 0x4d4   :  { %v1660_v40 = vadd.f32 %v1652_v19, %v1643_v55 }
 0x4d6   :  { %v1668_v49 = vadd.f32 %v1660_v40, %v1644_v59 }
 0x4d8   :  { %v1672_v36 = vpack.c.bf16 %v1668_v49, %v1667_v15 }
 0x4da   :  { %2022 = vmatmul.mubr.msk.bf16.gmra.mrb[36].mxu0 %vm105_vm0, %v1672_v36 }
 0x59d   :  { %v2019_v33 = vpop.f32.mrb[32].mxu0 }
 0x59e   :  { %v1751_v54 = vadd.f32 %v2019_v33, %v1838_v37  ;;  %v1742_v41 = vpop.f32.mrb[33].mxu0 }
 0x59f   :  { %v1743_v43 = vadd.f32 %v1838_v37, %v1742_v41  ;;  %v2020_v26 = vpop.f32.mrb[34].mxu0 }
 0x5a0   :  { %1775 = vst.msk [vmem:[#allocation10 + $0x10] sm:$0xff] %vm105_vm0, %v1751_v54  ;;  %v1754_v20 = vadd.f32 %v2020_v26, %v1838_v37  ;;  %v1745_v12 = vpop.f32.mrb[35].mxu0 }
 0x5a1   :  { %1773 = vst.msk [vmem:[#allocation10] sm:$0xff] %vm105_vm0, %v1743_v43  ;;  %v1746_v22 = vadd.f32 %v1838_v37, %v1745_v12 }
 0x5a2   :  { %1776 = vst.msk [vmem:[#allocation10 + $0x18] sm:$0xff] %vm105_vm0, %v1754_v20 }
 0x5a3   :  { %1774 = vst.msk [vmem:[#allocation10 + $0x8] sm:$0xff] %vm105_vm0, %v1746_v22 }
 0x5ad   :  { %v2023_v34 = vpop.f32.mrb[36].mxu0 }
 0x5ae   :  { %v1767_v24 = vadd.f32 %v2023_v34, %v1838_v37  ;;  %v1758_v48 = vpop.f32.mrb[37].mxu0 }
 0x5af   :  { %v1759_v29 = vadd.f32 %v1838_v37, %v1758_v48  ;;  %v2024_v11 = vpop.f32.mrb[38].mxu0 }
 0x5b0   :  { %1779 = vst.msk [vmem:[#allocation10 + $0x30] sm:$0xff] %vm105_vm0, %v1767_v24  ;;  %v1770_v62 = vadd.f32 %v2024_v11, %v1838_v37  ;;  %v1761_v31 = vpop.f32.mrb[39].mxu0 }
 0x5b1   :  { %1777 = vst.msk [vmem:[#allocation10 + $0x20] sm:$0xff] %vm105_vm0, %v1759_v29  ;;  %v1762_v1 = vadd.f32 %v1838_v37, %v1761_v31 }
 0x5b2   :  { %1780 = vst.msk [vmem:[#allocation10 + $0x38] sm:$0xff] %vm105_vm0, %v1770_v62 }
 0x5b3   :  { %1778 = vst.msk [vmem:[#allocation10 + $0x28] sm:$0xff] %vm105_vm0, %v1762_v1 }
 0x5b4   :  { %2290 = shalt.err (!%p2287_p8)
}
 0x5b5   :  { %s2291_s24 = scalar_lea.hbm %s3007_s5, 1024 }
 0x5b6   :  { %p2292_p9 = scmp.ne.s32.totalorder %s3007_s5, %s2291_s24  ;;  %p2295_p10 = scmp.lt.u32.totalorder %s2291_s24, %s3007_s5 }
 0x5b8   :  { %p2297_p11 = pnand %p2295_p10, %p2292_p9 }
 0x5ba   :  { %2300 = shalt.err (!%p2297_p11)
}
 0x5bb   :  { %1792 = dma.vmem_to_hbm [thread:$0]  %s1787_s20, 1024, %s3007_s5, [#allocation4], %s2313_s1, %s2313_s1, %s2314_s17  }
 0x5bc   :  { %2307 = dma.done.wait [#allocation4], 1024  }
 0x5bd   :  { %2308 = vsyncadd [#allocation4], 4294966272 }
 0x5be   :  { %1796 = vsyncpa [#allocation3], 1 }
 0x5bf   :  { %1797 = vsyncpa [#allocation6], 1 }
 0x5c0   :  { %1798 = vsyncpa [#allocation9], 1 }
 0x5c1   :  { %1799 = vsyncpa [#allocation4], 1 }

</bundles_post_ra>
